<compile_context>
chip_gen: v6e
topology: v6e:2x2x1
jax: 0.10.0
libtpu: 0.0.40
codegen_flags: <defaults>
</compile_context>

<pallas_src>
import jax
import jax.numpy as jnp
from jax.experimental import pallas as pl
from jax.experimental.pallas import tpu as pltpu

INPUT_SIZE = 784
HIDDEN1 = 500
HIDDEN2 = 300
NUM_CLASSES = 10

# Lane-padded internal dims (multiples of 128 for dense MXU columns / stores).
H1P = 512
H2P = 384
NCP = 128


def _round_up(n, m):
    return (n + m - 1) // m * m


def mlp_tanh_kernel(x_ref, w1_ref, b1_ref, w2_ref, b2_ref, w3_ref, b3_ref, o_ref):
    x = x_ref[...]                                                       # (TB, 784) bf16
    h1 = jnp.tanh(
        jnp.dot(x, w1_ref[...], preferred_element_type=jnp.float32) + b1_ref[...]
    )                                                                    # (TB, 512) f32
    h2 = jnp.tanh(
        jnp.dot(h1.astype(jnp.bfloat16), w2_ref[...],
                preferred_element_type=jnp.float32) + b2_ref[...]
    )                                                                    # (TB, 384) f32
    out = jnp.dot(h2.astype(jnp.bfloat16), w3_ref[...],
                  preferred_element_type=jnp.float32) + b3_ref[...]      # (TB, 128) f32
    o_ref[...] = out.astype(o_ref.dtype)


def prepare_params(w1, b1, w2, b2, w3, b3):
    """Zero-pad to lane-friendly dims; weights -> bf16, biases stay f32.

    Done once at model-setup time (not per forward call). Zero padding keeps
    the forward pass numerically identical on the real (unpadded) outputs.
    """
    def pad_w(w, rows, cols):
        return jnp.pad(
            w, ((0, rows - w.shape[0]), (0, cols - w.shape[1]))
        ).astype(jnp.bfloat16)

    def pad_b(b, cols):
        return jnp.pad(b, ((0, 0), (0, cols - b.shape[1]))).astype(jnp.float32)

    return (
        pad_w(w1, INPUT_SIZE, H1P), pad_b(b1, H1P),
        pad_w(w2, H1P, H2P),        pad_b(b2, H2P),
        pad_w(w3, H2P, NCP),        pad_b(b3, NCP),
    )


def neural_net_tanh(x, params, *, tb=256):
    """Forward pass. `params` is the output of prepare_params. x: (B, 784) f32."""
    w1, b1, w2, b2, w3, b3 = params
    B = x.shape[0]

    # Batch tile: multiple of 8 sublanes; shrink for tiny batches.
    tb = min(tb, _round_up(max(B, 8), 8))
    bp = _round_up(B, tb)

    x = x.astype(jnp.bfloat16)
    if bp != B:
        x = jnp.pad(x, ((0, bp - B), (0, 0)))

    grid = (bp // tb,)
    out_padded = pl.pallas_call(
        mlp_tanh_kernel,
        out_shape=jax.ShapeDtypeStruct((bp, NCP), jnp.float32),
        grid=grid,
        in_specs=[
            pl.BlockSpec((tb, INPUT_SIZE), lambda i: (i, 0)),   # x tile per grid step
            pl.BlockSpec((INPUT_SIZE, H1P), lambda i: (0, 0)),  # weights: VMEM-resident
            pl.BlockSpec((1, H1P), lambda i: (0, 0)),
            pl.BlockSpec((H1P, H2P), lambda i: (0, 0)),
            pl.BlockSpec((1, H2P), lambda i: (0, 0)),
            pl.BlockSpec((H2P, NCP), lambda i: (0, 0)),
            pl.BlockSpec((1, NCP), lambda i: (0, 0)),
        ],
        out_specs=pl.BlockSpec((tb, NCP), lambda i: (i, 0)),
        compiler_params=pltpu.CompilerParams(
            dimension_semantics=("parallel",),   # megacore batch sharding on v7x
            vmem_limit_bytes=16 << 20,
        ),
    )(x, w1, b1, w2, b2, w3, b3)

    return out_padded[:B, :NUM_CLASSES]


def init_linear(key, fan_in, fan_out):
    # Deterministic init mimicking nn.Linear's U(-1/sqrt(fan_in), 1/sqrt(fan_in)).
    kw, kb = jax.random.split(key)
    bound = 1.0 / jnp.sqrt(float(fan_in))
    w = jax.random.uniform(kw, (fan_in, fan_out), jnp.float32, -bound, bound)
    b = jax.random.uniform(kb, (1, fan_out), jnp.float32, -bound, bound)
    return w, b


if __name__ == "__main__":
    key = jax.random.PRNGKey(0)
    kx, k1, k2, k3 = jax.random.split(key, 4)

    B = 16  # small batch; tb=8 below exercises a 2-step batch grid
    x = jax.random.normal(kx, (B, INPUT_SIZE), jnp.float32)

    w1, b1 = init_linear(k1, INPUT_SIZE, HIDDEN1)
    w2, b2 = init_linear(k2, HIDDEN1, HIDDEN2)
    w3, b3 = init_linear(k3, HIDDEN2, NUM_CLASSES)

    params = prepare_params(w1, b1, w2, b2, w3, b3)

    out = neural_net_tanh(x, params, tb=8)
    out = jax.block_until_ready(out)

    # Correctness check against a pure-JAX f32 reference (tolerance loosened
    # because matmul operands are bf16; accumulation stays f32).
    ref = jnp.tanh(x @ w1 + b1)
    ref = jnp.tanh(ref @ w2 + b2)
    ref = ref @ w3 + b3
    assert out.shape == (B, NUM_CLASSES)
    assert jnp.allclose(out, ref, atol=3e-2, rtol=3e-2), (
        float(jnp.max(jnp.abs(out - ref)))
    )

    print("KERNEL_OK")
</pallas_src>

<mosaic_0001>
module attributes {stable_mosaic.version = 11 : i64} {
  func.func @mlp_tanh_kernel(%arg0: i32, %arg1: memref<8x784xbf16, #tpu.memory_space<vmem>>, %arg2: memref<784x512xbf16, #tpu.memory_space<vmem>>, %arg3: memref<1x512xf32, #tpu.memory_space<vmem>>, %arg4: memref<512x384xbf16, #tpu.memory_space<vmem>>, %arg5: memref<1x384xf32, #tpu.memory_space<vmem>>, %arg6: memref<384x128xbf16, #tpu.memory_space<vmem>>, %arg7: memref<1x128xf32, #tpu.memory_space<vmem>>, %arg8: memref<8x128xf32, #tpu.memory_space<vmem>>) attributes {dimension_semantics = [#tpu.dimension_semantics<parallel>], iteration_bounds = array<i64: 2>, scalar_prefetch = 0 : i64, scratch_operands = 0 : i64, tpu.core_type = #tpu.core_type<tc>, window_params = [{transform_indices = @transform_0, window_bounds = array<i64: 8, 784>}, {pipeline_mode = #tpu.pipeline_mode<synchronous>, transform_indices = @transform_1, window_bounds = array<i64: 784, 512>}, {pipeline_mode = #tpu.pipeline_mode<synchronous>, transform_indices = @transform_2, window_bounds = array<i64: 1, 512>}, {pipeline_mode = #tpu.pipeline_mode<synchronous>, transform_indices = @transform_3, window_bounds = array<i64: 512, 384>}, {pipeline_mode = #tpu.pipeline_mode<synchronous>, transform_indices = @transform_4, window_bounds = array<i64: 1, 384>}, {pipeline_mode = #tpu.pipeline_mode<synchronous>, transform_indices = @transform_5, window_bounds = array<i64: 384, 128>}, {pipeline_mode = #tpu.pipeline_mode<synchronous>, transform_indices = @transform_6, window_bounds = array<i64: 1, 128>}, {transform_indices = @transform_7, window_bounds = array<i64: 8, 128>}]} {
    %c0 = arith.constant 0 : index
    %c0_0 = arith.constant 0 : index
    %0 = vector.load %arg1[%c0, %c0_0] : memref<8x784xbf16, #tpu.memory_space<vmem>>, vector<8x784xbf16>
    %c0_1 = arith.constant 0 : index
    %c0_2 = arith.constant 0 : index
    %1 = vector.load %arg2[%c0_1, %c0_2] : memref<784x512xbf16, #tpu.memory_space<vmem>>, vector<784x512xbf16>
    %cst = arith.constant dense<0.000000e+00> : vector<8x512xf32>
    %2 = tpu.matmul %0, %1, %cst {dimension_numbers = #tpu.dot_dimension_numbers<[1], [0], [0], [1], [0, 0, 1, 1], [], []>} : vector<8x784xbf16>, vector<784x512xbf16>, vector<8x512xf32> -> vector<8x512xf32>
    %c0_3 = arith.constant 0 : index
    %c0_4 = arith.constant 0 : index
    %3 = vector.load %arg3[%c0_3, %c0_4] : memref<1x512xf32, #tpu.memory_space<vmem>>, vector<1x512xf32>
    %4 = vector.broadcast %3 : vector<1x512xf32> to vector<8x512xf32>
    %5 = arith.addf %2, %4 : vector<8x512xf32>
    %6 = math.tanh %5 : vector<8x512xf32>
    %7 = arith.truncf %6 : vector<8x512xf32> to vector<8x512xbf16>
    %c0_5 = arith.constant 0 : index
    %c0_6 = arith.constant 0 : index
    %8 = vector.load %arg4[%c0_5, %c0_6] : memref<512x384xbf16, #tpu.memory_space<vmem>>, vector<512x384xbf16>
    %cst_7 = arith.constant dense<0.000000e+00> : vector<8x384xf32>
    %9 = tpu.matmul %7, %8, %cst_7 {dimension_numbers = #tpu.dot_dimension_numbers<[1], [0], [0], [1], [0, 0, 1, 1], [], []>} : vector<8x512xbf16>, vector<512x384xbf16>, vector<8x384xf32> -> vector<8x384xf32>
    %c0_8 = arith.constant 0 : index
    %c0_9 = arith.constant 0 : index
    %10 = vector.load %arg5[%c0_8, %c0_9] : memref<1x384xf32, #tpu.memory_space<vmem>>, vector<1x384xf32>
    %11 = vector.broadcast %10 : vector<1x384xf32> to vector<8x384xf32>
    %12 = arith.addf %9, %11 : vector<8x384xf32>
    %13 = math.tanh %12 : vector<8x384xf32>
    %14 = arith.truncf %13 : vector<8x384xf32> to vector<8x384xbf16>
    %c0_10 = arith.constant 0 : index
    %c0_11 = arith.constant 0 : index
    %15 = vector.load %arg6[%c0_10, %c0_11] : memref<384x128xbf16, #tpu.memory_space<vmem>>, vector<384x128xbf16>
    %cst_12 = arith.constant dense<0.000000e+00> : vector<8x128xf32>
    %16 = tpu.matmul %14, %15, %cst_12 {dimension_numbers = #tpu.dot_dimension_numbers<[1], [0], [0], [1], [0, 0, 1, 1], [], []>} : vector<8x384xbf16>, vector<384x128xbf16>, vector<8x128xf32> -> vector<8x128xf32>
    %c0_13 = arith.constant 0 : index
    %c0_14 = arith.constant 0 : index
    %17 = vector.load %arg7[%c0_13, %c0_14] : memref<1x128xf32, #tpu.memory_space<vmem>>, vector<1x128xf32>
    %18 = vector.broadcast %17 : vector<1x128xf32> to vector<8x128xf32>
    %19 = arith.addf %16, %18 : vector<8x128xf32>
    %c0_15 = arith.constant 0 : index
    %c0_16 = arith.constant 0 : index
    %20 = vector.load %arg8[%c0_15, %c0_16] : memref<8x128xf32, #tpu.memory_space<vmem>>, vector<8x128xf32>
    tpu.vector_store %arg8[%c0_15, %c0_16], %19 {strides = array<i32>} : memref<8x128xf32, #tpu.memory_space<vmem>>, vector<8x128xf32>,
    return
  }
  func.func @transform_0(%arg0: i32) -> (i32, i32) {
    %c0_i32 = arith.constant 0 : i32
    %c0_i32_0 = arith.constant 0 : i32
    return %arg0, %c0_i32 : i32, i32
  }
  func.func @transform_1(%arg0: i32) -> (i32, i32) {
    %c0_i32 = arith.constant 0 : i32
    %c0_i32_0 = arith.constant 0 : i32
    %c0_i32_1 = arith.constant 0 : i32
    return %c0_i32, %c0_i32_0 : i32, i32
  }
  func.func @transform_2(%arg0: i32) -> (i32, i32) {
    %c0_i32 = arith.constant 0 : i32
    %c0_i32_0 = arith.constant 0 : i32
    %c0_i32_1 = arith.constant 0 : i32
    return %c0_i32, %c0_i32_0 : i32, i32
  }
  func.func @transform_3(%arg0: i32) -> (i32, i32) {
    %c0_i32 = arith.constant 0 : i32
    %c0_i32_0 = arith.constant 0 : i32
    %c0_i32_1 = arith.constant 0 : i32
    return %c0_i32, %c0_i32_0 : i32, i32
  }
  func.func @transform_4(%arg0: i32) -> (i32, i32) {
    %c0_i32 = arith.constant 0 : i32
    %c0_i32_0 = arith.constant 0 : i32
    %c0_i32_1 = arith.constant 0 : i32
    return %c0_i32, %c0_i32_0 : i32, i32
  }
  func.func @transform_5(%arg0: i32) -> (i32, i32) {
    %c0_i32 = arith.constant 0 : i32
    %c0_i32_0 = arith.constant 0 : i32
    %c0_i32_1 = arith.constant 0 : i32
    return %c0_i32, %c0_i32_0 : i32, i32
  }
  func.func @transform_6(%arg0: i32) -> (i32, i32) {
    %c0_i32 = arith.constant 0 : i32
    %c0_i32_0 = arith.constant 0 : i32
    %c0_i32_1 = arith.constant 0 : i32
    return %c0_i32, %c0_i32_0 : i32, i32
  }
  func.func @transform_7(%arg0: i32) -> (i32, i32) {
    %c0_i32 = arith.constant 0 : i32
    %c0_i32_0 = arith.constant 0 : i32
    return %arg0, %c0_i32 : i32, i32
  }
}

</mosaic_0001>

<bundles_post_ra>
// kernel: tpu_custom_call.1
= control target key start
LH: loop header
LB: loop body
LE: loop exit
PB: predicated region body
PF: predicated region fallthrough
CT: control target
= control target key end

     0   :  { %s4689_s0 = inlined_call_operand.hbm [shape: bf16[16,784], index: 0, kind: input, shape index: {}]   ;;  %s4690_s1 = inlined_call_operand.hbm [shape: bf16[784,512], index: 1, kind: input, shape index: {}]   ;;  %s4691_s2 = inlined_call_operand.hbm [shape: f32[1,512], index: 2, kind: input, shape index: {}]   ;;  %s4692_s3 = inlined_call_operand.hbm [shape: bf16[512,384], index: 3, kind: input, shape index: {}]   ;;  %s4693_s4 = inlined_call_operand.vmem [shape: f32[1,384], index: 4, kind: input, shape index: {}]   ;;  %s4694_s5 = inlined_call_operand.hbm [shape: bf16[384,128], index: 5, kind: input, shape index: {}]   ;;  %s4695_s6 = inlined_call_operand.vmem [shape: f32[1,128], index: 6, kind: input, shape index: {}]   ;;  %s4696_s7 = inlined_call_operand.hbm [shape: f32[16,128], index: 7, kind: output, shape index: {}]  }
   0x1   :  { %4701 = sst [smem:[#allocation16_spill]] %s4690_s1 }
   0x2   :  { %4702 = sst [smem:[#allocation17_spill]] %s4691_s2 }
   0x3   :  { %12 = vsyncpa [#allocation3], 0 }
   0x4   :  { %14 = vsyncpa [#allocation3 + $0x1], 0 }
   0x5   :  { %15 = vsyncpa [#allocation6], 0 }
   0x6   :  { %16 = vsyncpa [#allocation9], 0 }
   0x7   :  { %17 = vsyncpa [#allocation4], 0 }
   0x8   :  { %19 = vsyncpa [#allocation4 + $0x1], 0  ;;  %s4412_s24 = smov 0   ;;  %s4414_s25 = smov 0  }
   0x9   :  { %s4416_s26 = smov 0   ;;  %s4418_s27 = smov 0  }
   0xa LB: > { %s4357_s28 = smov [#allocation5]   ;;  %s4433_s30 = sadd.s32 4294967295, %s4355_s27   ;;  %s4355_s27 = sphi %s4418_s27, %s4723_s27   ;;  %s4351_s26 = sphi %s4416_s26, %s4722_s26   ;;  %s4347_s25 = sphi %s4414_s25, %s4721_s25   ;;  %s4343_s24 = sphi %s4412_s24, %s4720_s24  }
   0xb   : > { %s220_s29 = sshll.u32 %s4357_s28, 4  ;;  %p3146_p0 = scmp.ge.s32.totalorder %s4355_s27, 1  ;;  %s221_s29 = int_to_ptr.vmem [resolvable:$true] %s220_s29 }
   0xc   : > { %p4697_p1 = scmp.eq.s32.totalorder %s4433_s30, 0  ;;  %p208_p2 = scmp.lt.s32.totalorder %s4355_s27, 3 }
   0xd   : > { %s4358_s9 = smov [#allocation8]   ;;  %s4359_s12 = smov [#allocation7]  }
   0xe   : > { %p4438_p3 = pnand %p3146_p0, %p208_p2  ;;  %s244_s10 = sshll.u32 %s4358_s9, 4  ;;  %s4451_s10 = int_to_ptr.vmem [resolvable:$true] %s244_s10 }
   0xf   : > { %s4453_s13 = sshll.u32 %s4359_s12, 4  ;;  %s4162_s14 = scalar_lea.vmem %s221_s29, 25088  ;;  %s235_s13 = int_to_ptr.vmem [resolvable:$true] %s4453_s13 }
  0x10   : > { %s4703_s8 = scalar_select %p4438_p3, 1, 0 }
  0x11   : > { %p3607_p5 = pneg %p4438_p3  ;;  %p4163_p8 = scmp.ne.s32.totalorder %s221_s29, %s4162_s14 }
  0x12   : > { %p4170_p11 = scmp.lt.s32.totalorder %s221_s29, %s221_s29  ;;  %p4171_p12 = scmp.lt.s32.totalorder %s4162_s14, %s4162_s14 }
  0x13   : > { %p4447_p6 = pnand %p3607_p5, %p4697_p1 }
  0x14   : > { %p4172_p13 = por %p4171_p12, %p4170_p11 }
  0x15   : > { %p4153_p7 = pneg %p4447_p6 }
  0x17   : > { %p4165_p9 = pnand %p4163_p8, %p4153_p7 }
  0x19   : > { %p4166_p10 = pneg %p4165_p9 }
  0x1b   : > { %p4173_p0 = pnand %p4172_p13, %p4166_p10 }
  0x1d   : > { %4176 = shalt.err (!%p4173_p0)
}
  0x1e   : > { %s4360_s15 = smov 256   ;;  %s4361_s16 = smov 16  }
  0x1f   : > { %s4705_s1 = sld [smem:[#allocation16_spill]]  ;;  %s4188_s19 = scalar_lea.vmem %s4451_s10, 12288 }
  0x20   : > { %p4189_p2 = scmp.ne.s32.totalorder %s4451_s10, %s4188_s19  ;;  %p4196_p9 = scmp.lt.s32.totalorder %s4451_s10, %s4451_s10 }
  0x21   : > { %p4197_p10 = scmp.lt.s32.totalorder %s4188_s19, %s4188_s19 }
  0x22   : > { %p4191_p5 = pnand %p4189_p2, %p4153_p7 }
  0x23   : > { %p4198_p11 = por %p4197_p10, %p4196_p9 }
  0x24   : > { %p4192_p8 = pneg %p4191_p5 }
  0x25   : > { %3610 = dma.hbm_to_vmem [thread:$0]  (!%p4447_p6), %s4705_s1, 25088, %s221_s29, [#allocation6], %s4360_s15, %s4360_s15, %s4361_s16  }
  0x26   : > { %p4199_p12 = pnand %p4198_p11, %p4192_p8 }
  0x28   : > { %4202 = shalt.err (!%p4199_p12)
}
  0x29   : > { %s4362_s20 = smov 192   ;;  %s4363_s21 = smov 12  }
  0x2a   : > { %3616 = dma.hbm_to_vmem [thread:$0]  (!%p4447_p6), %s4692_s3, 12288, %s4451_s10, [#allocation9], %s4362_s20, %s4362_s20, %s4363_s21  }
  0x2b   : > { %s4214_s28 = scalar_lea.vmem %s235_s13, 64  ;;  %p4222_p5 = scmp.lt.s32.totalorder %s235_s13, %s235_s13 }
  0x2c   : > { %p4215_p13 = scmp.ne.s32.totalorder %s235_s13, %s4214_s28  ;;  %p4223_p8 = scmp.lt.s32.totalorder %s4214_s28, %s4214_s28 }
  0x2e   : > { %p4217_p0 = pnand %p4215_p13, %p4153_p7  ;;  %p4224_p9 = por %p4223_p8, %p4222_p5 }
  0x30   : > { %p4218_p2 = pneg %p4217_p0 }
  0x32   : > { %p4225_p10 = pnand %p4224_p9, %p4218_p2 }
  0x34   : > { %4228 = shalt.err (!%p4225_p10)
}
  0x35   : > { %s4706_s2 = sld [smem:[#allocation17_spill]]  ;;  %s4364_s10 = smov [#allocation10]  }
  0x36   : > { %s260_s12 = sshll.u32 %s4364_s10, 4  ;;  %s261_s12 = int_to_ptr.vmem [resolvable:$true] %s260_s12 }
  0x37   : > { %s4240_s14 = scalar_lea.vmem %s261_s12, 3072  ;;  %p4248_p0 = scmp.lt.s32.totalorder %s261_s12, %s261_s12 }
  0x38   : > { %p4241_p11 = scmp.ne.s32.totalorder %s261_s12, %s4240_s14  ;;  %p4249_p5 = scmp.lt.s32.totalorder %s4240_s14, %s4240_s14 }
  0x3a   : > { %p4243_p12 = pnand %p4241_p11, %p4153_p7  ;;  %p4250_p2 = por %p4249_p5, %p4248_p0 }
  0x3b   : > { %3613 = dma.hbm_to_vmem [thread:$0]  (!%p4447_p6), %s4706_s2, 64, %s235_s13, [#allocation6]  }
  0x3c   : > { %p4244_p13 = pneg %p4243_p12 }
  0x3e   : > { %p4251_p8 = pnand %p4250_p2, %p4244_p13 }
  0x40   : > { %4254 = shalt.err (!%p4251_p8)
}
  0x41   : > { %s4365_s15 = smov 64   ;;  %s4366_s13 = smov 4  }
  0x42   : > { %3619 = dma.hbm_to_vmem [thread:$0]  (!%p4447_p6), %s4694_s5, 3072, %s261_s12, [#allocation9], %s4365_s15, %s4365_s15, %s4366_s13  }
  0x43   : > { %s3145_s18 = sadd.s32 4294967294, %s4355_s27   ;;  %s4497_s19 = sadd.s32 1, %s4355_s27  }
  0x44   : > { %s29_s20 = ssub.s32 %s4355_s27, %s4497_s19  ;;  %s32_s21 = sadd.s32 1, %s4351_s26 }
  0x45   : > { %p30_p7 = scmp.eq.s32.totalorder %s29_s20, 0  ;;  %p39_p9 = scmp.ne.s32.totalorder %s4351_s26, %s4347_s25 }
  0x46   : > { %p40_p10 = scmp.eq.s32.totalorder %s4355_s27, 0  ;;  %p45_p11 = scmp.ne.s32.totalorder %s4347_s25, %s4343_s24 }
  0x47   : > { %s4508_s22 = scalar_select %p30_p7, %s4351_s26, %s32_s21  }
  0x48   : > { %p41_p12 = por %p40_p10, %p39_p9  ;;  %p4512_p13 = por %p4697_p1, %p45_p11 }
  0x49   : > { %p195_p6 = scmp.eq.s32.totalorder %s4433_s30, 1  ;;  %p201_p0 = scmp.eq.s32.totalorder %s3145_s18, 1 }
  0x4a   : > { %s4707_s11 = scalar_select %p4512_p13, 1, 0 }
  0x4b   : > { %p3632_p5 = scmp.lt.s32.totalorder %s4355_s27, 2  ;;  %s277_s23 = sand.u32 1, %s4351_s26  }
  0x4c   : > { %p4519_p2 = por %p195_p6, %p39_p9  ;;  %p4523_p8 = por %p201_p0, %p45_p11 }
  0x4d   : > { %s3584_s9 = smul.u32 28, %s277_s23  ;;  %p4528_p7 = pnand %p3632_p5, %p41_p12 }
  0x4e   : > { %s4708_s28 = scalar_select %p4519_p2, 1, 0 }
  0x4f   : > { %s4709_s29 = scalar_select %p4523_p8, 1, 0 }
  0x50   : > { %s3585_s10 = smul.u32 448, %s4355_s27  ;;  %s281_s16 = scalar_lea.vmem [#allocation2], %s3584_s9 }
  0x51   : > { %s289_s17 = sshll.u32 %s281_s16, 4  ;;  %s278_s18 = scalar_lea.sflag [#allocation3], %s277_s23  ;;  %s290_s17 = int_to_ptr.vmem [resolvable:$true] %s289_s17 }
  0x52   : > { %s4535_s13 = scalar_lea.hbm %s4689_s0, %s3585_s10  ;;  %p4257_p10 = pneg %p4528_p7 }
  0x53   : > { %s4255_s20 = scalar_lea.hbm %s4535_s13, 448  ;;  %s4260_s14 = scalar_lea.hbm %s4689_s0, 896 }
  0x54   : > { %p4256_p9 = scmp.ne.s32.totalorder %s4535_s13, %s4255_s20  ;;  %p4261_p6 = scmp.lt.s32.totalorder %s4535_s13, %s4689_s0 }
  0x55   : > { %p4262_p0 = scmp.lt.s32.totalorder %s4260_s14, %s4255_s20 }
  0x56   : > { %p4258_p11 = pnand %p4257_p10, %p4256_p9 }
  0x57   : > { %p4263_p5 = por %p4262_p0, %p4261_p6 }
  0x58   : > { %p4259_p12 = pneg %p4258_p11 }
  0x5a   : > { %p4264_p4 = pnand %p4263_p5, %p4259_p12 }
  0x5c   : > { %4267 = shalt.err (!%p4264_p4)
}
  0x5d   : > { %s4268_s9 = scalar_lea.vmem %s290_s17, 448  ;;  %s4367_s23 = smov [#allocation2]  }
  0x5e   : > { %p4269_p1 = scmp.ne.s32.totalorder %s290_s17, %s4268_s9  ;;  %s4273_s16 = sshll.u32 %s4367_s23, 4  ;;  %s4274_s16 = int_to_ptr.vmem [resolvable:$false] %s4273_s16 }
  0x5f   : > { %s4275_s2 = scalar_lea.vmem %s4274_s16, 896  ;;  %p4276_p9 = scmp.lt.s32.totalorder %s290_s17, %s4274_s16 }
  0x60   : > { %p4271_p8 = pnand %p4269_p1, %p4257_p10  ;;  %p4277_p11 = scmp.lt.s32.totalorder %s4275_s2, %s4268_s9 }
  0x62   : > { %p4272_p2 = pneg %p4271_p8  ;;  %p4278_p13 = por %p4277_p11, %p4276_p9 }
  0x64   : > { %p4279_p3 = pnand %p4278_p13, %p4272_p2 }
  0x66   : > { %4282 = shalt.err (!%p4279_p3)
}
  0x67   : > { %3623 = dma.hbm_to_vmem [thread:$0]  (!%p4528_p7), %s4535_s13, 448, %s290_s17, %s278_s18  }
  0x68   : > { %p4711_p12 = scmp.ne.s32.totalorder %s4703_s8, 0 }
  0x69   : > { %s4554_s1 = sand.u32 (!%p4711_p12), 1, %s4347_s25   ;;  %p4712_p1 = scmp.ne.s32.totalorder (!%p4711_p12), %s4707_s11, 0 }
  0x6a   : > { %298 = sbr.rel (%p4711_p12) target bundleno = 992 (0x3e0), region = 48  ;;  %s301_s21 = scalar_lea.sflag (!%p4711_p12), [#allocation3], %s4554_s1 }
  0x6b   : > { %s3586_s20 = smul.u32 (!%p4711_p12), 28, %s4554_s1 }
  0x6d   : > { %s4558_s14 = scalar_lea.vmem (!%p4711_p12), [#allocation2], %s3586_s20 }
  0x6f   : > { %4326 = dma.done.wait (%p4712_p1), %s301_s21, 448  }
  0x70   : > { %4328 = vsyncadd (%p4712_p1), %s301_s21, 4294966848  ;;  %p4713_p3 = scmp.eq.s32.totalorder %s4433_s30, 0 }
  0x72   : > { %4330 = dma.done.wait (%p4713_p3), [#allocation6], 25152   ;;  %p4714_p4 = pmov %p4713_p3 }
  0x73   : > { %p4715_p13 = pmov %p4713_p3 }
  0x74   : > { %4332 = vsyncadd (%p4714_p4), [#allocation6], 4294942144 }
  0x75   : > { %4334 = dma.done.wait (%p4715_p13), [#allocation9], 15360   ;;  %p4716_p2 = pmov %p4713_p3 }
  0x76   : > { %v3683_v0 = vld [vmem:[#allocation5 + $0xe4] ss:$16 sps:$4 sm:$0xff]   ;;  %v3687_v2 = vld [vmem:[#allocation5 + $0xe0] ss:$16 sps:$4 sm:$0xff]   ;;  %vm1578_vm0 = vcmask 130048   ;;  %vm4370_vm1 = vmmov 0  }
  0x77   : > { %4336 = vsyncadd (%p4716_p2), [#allocation9], 4294951936  ;;  %v3685_v1 = vld [vmem:[#allocation5 + $0x2e4] ss:$16 sps:$4 sm:$0xff]   ;;  %1582 = vmatprep.subr.bf16.mxu0 %v3683_v0  ;;  %v3688_v3 = vld [vmem:[#allocation5 + $0x2e0] ss:$16 sps:$4 sm:$0xff]  }
  0x78   : > { %1623 = vmatprep.subr.bf16.mxu1 %v3685_v1  ;;  %v3689_v4 = vld [vmem:[#allocation5 + $0xc4] ss:$16 sps:$4 sm:$0xff]   ;;  %1583 = vmatpush1.bf16.msra.mxu0 %v3687_v2  ;;  %v3693_v6 = vld [vmem:[#allocation5 + $0xc0] ss:$16 sps:$4 sm:$0xff]   ;;  %s3158_s11 = sshll.u32 %s4554_s1, 3  ;;  %s3486_s17 = sshll.u32 %s4433_s30, 7 }
  0x79   : > { %1624 = vmatpush1.bf16.msra.mxu1 %v3688_v3  ;;  %v3691_v5 = vld [vmem:[#allocation5 + $0x2c4] ss:$16 sps:$4 sm:$0xff]   ;;  %1584 = vmatprep.subr.bf16.mxu0 %v3689_v4  ;;  %v3694_v7 = vld [vmem:[#allocation5 + $0x2c0] ss:$16 sps:$4 sm:$0xff]   ;;  %s350_s18 = scalar_lea.vmem [#allocation11], %s3158_s11  ;;  %s4646_s23 = scalar_lea.hbm %s4696_s7, %s3486_s17 }
  0x7a   : > { %1625 = vmatprep.subr.bf16.mxu1 %v3691_v5  ;;  %v3695_v8 = vld [vmem:[#allocation5 + $0xa4] ss:$16 sps:$4 sm:$0xff]   ;;  %v3699_v10 = vld [vmem:[#allocation5 + $0xa0] ss:$16 sps:$4 sm:$0xff]   ;;  %s3037_s15 = sshll.u32 %s350_s18, 4  ;;  %s3024_s16 = scalar_lea.sflag [#allocation4], %s4554_s1  ;;  %s4648_s15 = int_to_ptr.vmem [resolvable:$true] %s3037_s15 }
  0x7b   : > { %v3697_v9 = vld [vmem:[#allocation5 + $0x2a4] ss:$16 sps:$4 sm:$0xff]   ;;  %v3700_v11 = vld [vmem:[#allocation5 + $0x2a0] ss:$16 sps:$4 sm:$0xff]   ;;  %s4283_s30 = scalar_lea.vmem %s4648_s15, 128  ;;  %p4717_p7 = scmp.ne.s32.totalorder %s4708_s28, 0 }
  0x7c   : > { %1585 = vmatpush1.bf16.msra.mxu0 %v3693_v6  ;;  %v3701_v12 = vld [vmem:[#allocation5 + $0x84] ss:$16 sps:$4 sm:$0xff]   ;;  %v3705_v14 = vld [vmem:[#allocation5 + $0x80] ss:$16 sps:$4 sm:$0xff]   ;;  %p4284_p8 = scmp.ne.s32.totalorder %s4648_s15, %s4283_s30  ;;  %s4371_s20 = smov [#allocation11]  }
  0x7d   : > { %1626 = vmatpush1.bf16.msra.mxu1 %v3694_v7  ;;  %1586 = vmatprep.subr.bf16.mxu0 %v3695_v8  ;;  %v3703_v13 = vld [vmem:[#allocation5 + $0x284] ss:$16 sps:$4 sm:$0xff]   ;;  %v3706_v15 = vld [vmem:[#allocation5 + $0x280] ss:$16 sps:$4 sm:$0xff]   ;;  %s4287_s21 = sshll.u32 %s4371_s20, 4  ;;  %s4288_s21 = int_to_ptr.vmem [resolvable:$false] %s4287_s21 }
  0x7e   : > { %1627 = vmatprep.subr.bf16.mxu1 %v3697_v9  ;;  %v3707_v16 = vld [vmem:[#allocation5 + $0x64] ss:$16 sps:$4 sm:$0xff]   ;;  %v3711_v18 = vld [vmem:[#allocation5 + $0x60] ss:$16 sps:$4 sm:$0xff]   ;;  %p4285_p10 = pnand %p4284_p8, %p4717_p7  ;;  %p4290_p0 = scmp.lt.s32.totalorder %s4648_s15, %s4288_s21 }
  0x7f   : > { %v3709_v17 = vld [vmem:[#allocation5 + $0x264] ss:$16 sps:$4 sm:$0xff]   ;;  %v3712_v19 = vld [vmem:[#allocation5 + $0x260] ss:$16 sps:$4 sm:$0xff]  }
  0x80   : > { %1587 = vmatpush1.bf16.msra.mxu0 %v3699_v10  ;;  %v3713_v20 = vld [vmem:[#allocation5 + $0x44] ss:$16 sps:$4 sm:$0xff]   ;;  %v3717_v22 = vld [vmem:[#allocation5 + $0x40] ss:$16 sps:$4 sm:$0xff]   ;;  %p4286_p6 = pneg %p4285_p10 }
  0x81   : > { %1628 = vmatpush1.bf16.msra.mxu1 %v3700_v11  ;;  %1588 = vmatprep.subr.bf16.mxu0 %v3701_v12  ;;  %v3715_v21 = vld [vmem:[#allocation5 + $0x244] ss:$16 sps:$4 sm:$0xff]   ;;  %v3718_v23 = vld [vmem:[#allocation5 + $0x240] ss:$16 sps:$4 sm:$0xff]   ;;  %v3794_v11 = vld [vmem:[#allocation5 + $0xec] ss:$16 sps:$4 sm:$0xff]  }
  0x82   : > { %1629 = vmatprep.subr.bf16.mxu1 %v3703_v13  ;;  %v3719_v24 = vld [vmem:[#allocation5 + $0x24] ss:$16 sps:$4 sm:$0xff]   ;;  %v3723_v26 = vld [vmem:[#allocation5 + $0x20] ss:$16 sps:$4 sm:$0xff]   ;;  %v4368_v13 = vmov 0  }
  0x83   : > { %v3721_v25 = vld [vmem:[#allocation5 + $0x224] ss:$16 sps:$4 sm:$0xff]   ;;  %v3724_v27 = vld [vmem:[#allocation5 + $0x220] ss:$16 sps:$4 sm:$0xff]  }
  0x84   : > { %1589 = vmatpush1.bf16.msra.mxu0 %v3705_v14  ;;  %v3725_v28 = vld [vmem:[#allocation5 + $0x4] ss:$16 sps:$4 sm:$0xff]   ;;  %v3729_v30 = vld [vmem:[#allocation5] ss:$16 sps:$4 sm:$0xff]  }
  0x85   : > { %1630 = vmatpush1.bf16.msra.mxu1 %v3706_v15  ;;  %1590 = vmatprep.subr.bf16.mxu0 %v3707_v16  ;;  %v3727_v29 = vld [vmem:[#allocation5 + $0x204] ss:$16 sps:$4 sm:$0xff]   ;;  %v3730_v31 = vld [vmem:[#allocation5 + $0x200] ss:$16 sps:$4 sm:$0xff]   ;;  %v3792_v15 = vld [vmem:[#allocation5 + $0xe8] ss:$16 sps:$4 sm:$0xff]  }
  0x86   : > { %1631 = vmatprep.subr.bf16.mxu1 %v3709_v17  ;;  %v3731_v32 = vld [vmem:[#allocation5 + $0x1e4] ss:$16 sps:$4 sm:$0xff]   ;;  %v3735_v34 = vld [vmem:[#allocation5 + $0x1e0] ss:$16 sps:$4 sm:$0xff]  }
  0x87   : > { %v3733_v33 = vld [vmem:[#allocation5 + $0x3e4] ss:$16 sps:$4 sm:$0xff]   ;;  %v3736_v35 = vld [vmem:[#allocation5 + $0x3e0] ss:$16 sps:$4 sm:$0xff]  }
  0x88   : > { %1591 = vmatpush1.bf16.msra.mxu0 %v3711_v18  ;;  %v3737_v36 = vld [vmem:[#allocation5 + $0x1c4] ss:$16 sps:$4 sm:$0xff]   ;;  %v3741_v38 = vld [vmem:[#allocation5 + $0x1c0] ss:$16 sps:$4 sm:$0xff]   ;;  %v3801_v18 = vld [vmem:[#allocation5 + $0xcc] ss:$16 sps:$4 sm:$0xff]  }
  0x89   : > { %1632 = vmatpush1.bf16.msra.mxu1 %v3712_v19  ;;  %1592 = vmatprep.subr.bf16.mxu0 %v3713_v20  ;;  %v3739_v37 = vld [vmem:[#allocation5 + $0x3c4] ss:$16 sps:$4 sm:$0xff]   ;;  %v3742_v39 = vld [vmem:[#allocation5 + $0x3c0] ss:$16 sps:$4 sm:$0xff]   ;;  %v3799_v20 = vld [vmem:[#allocation5 + $0xc8] ss:$16 sps:$4 sm:$0xff]  }
  0x8a   : > { %1633 = vmatprep.subr.bf16.mxu1 %v3715_v21  ;;  %v3743_v40 = vld [vmem:[#allocation5 + $0x1a4] ss:$16 sps:$4 sm:$0xff]   ;;  %v3747_v42 = vld [vmem:[#allocation5 + $0x1a0] ss:$16 sps:$4 sm:$0xff]  }
  0x8b   : > { %v3745_v41 = vld [vmem:[#allocation5 + $0x3a4] ss:$16 sps:$4 sm:$0xff]   ;;  %v3748_v43 = vld [vmem:[#allocation5 + $0x3a0] ss:$16 sps:$4 sm:$0xff]  }
  0x8c   : > { %1593 = vmatpush1.bf16.msra.mxu0 %v3717_v22  ;;  %v3749_v44 = vld [vmem:[#allocation5 + $0x184] ss:$16 sps:$4 sm:$0xff]   ;;  %v3753_v49 = vld [vmem:[#allocation5 + $0x180] ss:$16 sps:$4 sm:$0xff]   ;;  %v3807_v22 = vld [vmem:[#allocation5 + $0xac] ss:$16 sps:$4 sm:$0xff]  }
  0x8d   : > { %1634 = vmatpush1.bf16.msra.mxu1 %v3718_v23  ;;  %1594 = vmatprep.subr.bf16.mxu0 %v3719_v24  ;;  %v3751_v45 = vld [vmem:[#allocation5 + $0x384] ss:$16 sps:$4 sm:$0xff]   ;;  %v3754_v50 = vld [vmem:[#allocation5 + $0x380] ss:$16 sps:$4 sm:$0xff]   ;;  %v3805_v24 = vld [vmem:[#allocation5 + $0xa8] ss:$16 sps:$4 sm:$0xff]  }
  0x8e   : > { %1635 = vmatprep.subr.bf16.mxu1 %v3721_v25  ;;  %v352_v46 = vld [vmem:[%s4558_s14] sm:$0xff]  ;;  %v353_v48 = vld [vmem:[%s4558_s14 + $0x8] sm:$0xff]  ;;  %v3798_v17 = vld [vmem:[%s4558_s14 + $0x18] ss:$0 sps:$4 sm:$0xff]  }
  0x8f   : > { %v4573_v47 = vcombine.high %v352_v46, %v352_v46  ;;  %v4576_v51 = vcombine.high %v353_v48, %v353_v48  ;;  %v3755_v52 = vld [vmem:[#allocation5 + $0x164] ss:$16 sps:$4 sm:$0xff]   ;;  %v3759_v54 = vld [vmem:[#allocation5 + $0x160] ss:$16 sps:$4 sm:$0xff]   ;;  %v4580_v6 = vcombine.low %v352_v46, %v352_v46  ;;  %v4582_v7 = vcombine.low %v353_v48, %v353_v48  ;;  %v3835_v46 = vld [vmem:[#allocation5 + $0x8] ss:$16 sps:$4 sm:$0xff]  }
  0x90   : > { %1595 = vmatpush1.bf16.msra.mxu0 %v3723_v26  ;;  %v3757_v53 = vld [vmem:[#allocation5 + $0x364] ss:$16 sps:$4 sm:$0xff]   ;;  %v3760_v55 = vld [vmem:[#allocation5 + $0x360] ss:$16 sps:$4 sm:$0xff]   ;;  %v3813_v26 = vld [vmem:[#allocation5 + $0x8c] ss:$16 sps:$4 sm:$0xff]  }
  0x91   : > { %1636 = vmatpush1.bf16.msra.mxu1 %v3724_v27  ;;  %1596 = vmatprep.subr.bf16.mxu0 %v3725_v28  ;;  %v3761_v56 = vld [vmem:[#allocation5 + $0x144] ss:$16 sps:$4 sm:$0xff]   ;;  %v3765_v58 = vld [vmem:[#allocation5 + $0x140] ss:$16 sps:$4 sm:$0xff]   ;;  %v3811_v28 = vld [vmem:[#allocation5 + $0x88] ss:$16 sps:$4 sm:$0xff]  }
  0x92   : > { %1637 = vmatprep.subr.bf16.mxu1 %v3727_v29  ;;  %1614 = vmatprep.mubr.bf16.mxu0 %v4573_v47  ;;  %v3763_v57 = vld [vmem:[#allocation5 + $0x344] ss:$16 sps:$4 sm:$0xff]   ;;  %v3766_v59 = vld [vmem:[#allocation5 + $0x340] ss:$16 sps:$4 sm:$0xff]   ;;  %v3843_v48 = vld [vmem:[#allocation5 + $0x1ec] ss:$16 sps:$4 sm:$0xff]  }
  0x93   : > { %1655 = vmatprep.mubr.bf16.mxu1 %v4576_v51  ;;  %v3767_v60 = vld [vmem:[#allocation5 + $0x124] ss:$16 sps:$4 sm:$0xff]   ;;  %v3771_v62 = vld [vmem:[#allocation5 + $0x120] ss:$16 sps:$4 sm:$0xff]  }
  0x94   : > { %1597 = vmatpush1.bf16.msra.mxu0 %v3729_v30  ;;  %v3769_v61 = vld [vmem:[#allocation5 + $0x324] ss:$16 sps:$4 sm:$0xff]   ;;  %v3772_v63 = vld [vmem:[#allocation5 + $0x320] ss:$16 sps:$4 sm:$0xff]   ;;  %v3819_v30 = vld [vmem:[#allocation5 + $0x6c] ss:$16 sps:$4 sm:$0xff]  }
  0x95   : > { %1638 = vmatpush1.bf16.msra.mxu1 %v3730_v31  ;;  %1598 = vmatprep.subr.bf16.mxu0 %v3731_v32  ;;  %v3773_v0 = vld [vmem:[#allocation5 + $0x104] ss:$16 sps:$4 sm:$0xff]   ;;  %v3777_v2 = vld [vmem:[#allocation5 + $0x100] ss:$16 sps:$4 sm:$0xff]  }
  0x96   : > { %1639 = vmatprep.subr.bf16.mxu1 %v3733_v33  ;;  %v3775_v1 = vld [vmem:[#allocation5 + $0x304] ss:$16 sps:$4 sm:$0xff]   ;;  %v3778_v3 = vld [vmem:[#allocation5 + $0x300] ss:$16 sps:$4 sm:$0xff]  }
  0x97   : > { %v3785_v4 = vld [vmem:[#allocation5 + $0x4e4] ss:$16 sps:$4 sm:$0xff]   ;;  %v3783_v8 = vld [vmem:[#allocation5 + $0x4e0] ss:$16 sps:$4 sm:$0xff]  }
  0x98   : > { %1599 = vmatpush2.bf16.msra.mxu0 %v3735_v34  ;;  %v3788_v5 = vld [vmem:[#allocation5 + $0x604] ss:$16 sps:$4 sm:$0xff]   ;;  %v3786_v9 = vld [vmem:[#allocation5 + $0x600] ss:$16 sps:$4 sm:$0xff]   ;;  %v3817_v34 = vld [vmem:[#allocation5 + $0x68] ss:$16 sps:$4 sm:$0xff]  }
  0x99   : > { %1640 = vmatpush2.bf16.msra.mxu1 %v3736_v35  ;;  %1600 = vmatprep.subr.bf16.mxu0 %v3737_v36  ;;  %v3791_v10 = vld [vmem:[#allocation5 + $0x4c4] ss:$16 sps:$4 sm:$0xff]   ;;  %v3789_v12 = vld [vmem:[#allocation5 + $0x4c0] ss:$16 sps:$4 sm:$0xff]   ;;  %v3825_v36 = vld [vmem:[#allocation5 + $0x4c] ss:$16 sps:$4 sm:$0xff]  }
  0x9a   : > { %1641 = vmatprep.subr.bf16.mxu1 %v3739_v37  ;;  %v3797_v14 = vld [vmem:[#allocation5 + $0x4a4] ss:$16 sps:$4 sm:$0xff]   ;;  %v3795_v16 = vld [vmem:[#allocation5 + $0x4a0] ss:$16 sps:$4 sm:$0xff]  }
  0x9b   : > { %v3804_v19 = vld [vmem:[#allocation5 + $0x484] ss:$16 sps:$4 sm:$0xff]   ;;  %v3802_v21 = vld [vmem:[#allocation5 + $0x480] ss:$16 sps:$4 sm:$0xff]  }
  0x9c   : > { %1601 = vmatpush2.bf16.msra.mxu0 %v3741_v38  ;;  %v3810_v23 = vld [vmem:[#allocation5 + $0x464] ss:$16 sps:$4 sm:$0xff]   ;;  %v3808_v25 = vld [vmem:[#allocation5 + $0x460] ss:$16 sps:$4 sm:$0xff]   ;;  %v3823_v38 = vld [vmem:[#allocation5 + $0x48] ss:$16 sps:$4 sm:$0xff]  }
  0x9d   : > { %1642 = vmatpush2.bf16.msra.mxu1 %v3742_v39  ;;  %1602 = vmatprep.subr.bf16.mxu0 %v3743_v40  ;;  %v3816_v27 = vld [vmem:[#allocation5 + $0x444] ss:$16 sps:$4 sm:$0xff]   ;;  %v3814_v29 = vld [vmem:[#allocation5 + $0x440] ss:$16 sps:$4 sm:$0xff]   ;;  %v3831_v40 = vld [vmem:[#allocation5 + $0x2c] ss:$16 sps:$4 sm:$0xff]  }
  0x9e   : > { %1643 = vmatprep.subr.bf16.mxu1 %v3745_v41  ;;  %v3822_v31 = vld [vmem:[#allocation5 + $0x424] ss:$16 sps:$4 sm:$0xff]   ;;  %v3820_v35 = vld [vmem:[#allocation5 + $0x420] ss:$16 sps:$4 sm:$0xff]  }
  0x9f   : > { %v4591_v32 = vld [vmem:[%s4558_s14 + $0x10] sm:$0xff]  ;;  %v3826_v39 = vld [vmem:[#allocation5 + $0x400] ss:$16 sps:$4 sm:$0xff]  }
  0xa0   : > { %1603 = vmatpush2.bf16.msra.mxu0 %v3747_v42  ;;  %v4595_v33 = vcombine.high %v4591_v32, %v4591_v32  ;;  %v3828_v37 = vld [vmem:[#allocation5 + $0x404] ss:$16 sps:$4 sm:$0xff]   ;;  %v3829_v42 = vld [vmem:[#allocation5 + $0x28] ss:$16 sps:$4 sm:$0xff]  }
  0xa1   : > { %1644 = vmatpush2.bf16.msra.mxu1 %v3748_v43  ;;  %1604 = vmatprep.subr.bf16.mxu0 %v3749_v44  ;;  %v3834_v41 = vld [vmem:[#allocation5 + $0x5e4] ss:$16 sps:$4 sm:$0xff]   ;;  %v3832_v43 = vld [vmem:[#allocation5 + $0x5e0] ss:$16 sps:$4 sm:$0xff]   ;;  %v3837_v44 = vld [vmem:[#allocation5 + $0xc] ss:$16 sps:$4 sm:$0xff]  }
  0xa2   : > { %1645 = vmatprep.subr.bf16.mxu1 %v3751_v45  ;;  %v3840_v45 = vld [vmem:[#allocation5 + $0x5c4] ss:$16 sps:$4 sm:$0xff]  }
  0xa4   : > { %1605 = vmatpush2.bf16.msra.mxu0 %v3753_v49  ;;  %v3846_v49 = vld [vmem:[#allocation5 + $0x5a4] ss:$16 sps:$4 sm:$0xff]  }
  0xa5   : > { %1646 = vmatpush2.bf16.msra.mxu1 %v3754_v50  ;;  %1606 = vmatprep.subr.bf16.mxu0 %v3755_v52  ;;  %v3841_v50 = vld [vmem:[#allocation5 + $0x1e8] ss:$16 sps:$4 sm:$0xff]   ;;  %v3844_v52 = vld [vmem:[#allocation5 + $0x5a0] ss:$16 sps:$4 sm:$0xff]  }
  0xa6   : > { %1647 = vmatprep.subr.bf16.mxu1 %v3757_v53  ;;  %v3849_v53 = vld [vmem:[#allocation5 + $0x1cc] ss:$16 sps:$4 sm:$0xff]  }
  0xa8   : > { %1607 = vmatpush2.bf16.msra.mxu0 %v3759_v54  ;;  %v3852_v54 = vld [vmem:[#allocation5 + $0x584] ss:$16 sps:$4 sm:$0xff]  }
  0xa9   : > { %1648 = vmatpush2.bf16.msra.mxu1 %v3760_v55  ;;  %1608 = vmatprep.subr.bf16.mxu0 %v3761_v56  ;;  %v3847_v55 = vld [vmem:[#allocation5 + $0x1c8] ss:$16 sps:$4 sm:$0xff]   ;;  %v3850_v56 = vld [vmem:[#allocation5 + $0x580] ss:$16 sps:$4 sm:$0xff]  }
  0xaa   : > { %1649 = vmatprep.subr.bf16.mxu1 %v3763_v57  ;;  %v3855_v57 = vld [vmem:[#allocation5 + $0x1ac] ss:$16 sps:$4 sm:$0xff]  }
  0xac   : > { %1609 = vmatpush2.bf16.msra.mxu0 %v3765_v58  ;;  %v3858_v58 = vld [vmem:[#allocation5 + $0x564] ss:$16 sps:$4 sm:$0xff]  }
  0xad   : > { %1650 = vmatpush2.bf16.msra.mxu1 %v3766_v59  ;;  %1610 = vmatprep.subr.bf16.mxu0 %v3767_v60  ;;  %v3853_v59 = vld [vmem:[#allocation5 + $0x1a8] ss:$16 sps:$4 sm:$0xff]   ;;  %v3856_v60 = vld [vmem:[#allocation5 + $0x560] ss:$16 sps:$4 sm:$0xff]  }
  0xae   : > { %1651 = vmatprep.subr.bf16.mxu1 %v3769_v61  ;;  %v3861_v61 = vld [vmem:[#allocation5 + $0x18c] ss:$16 sps:$4 sm:$0xff]  }
  0xb0   : > { %1611 = vmatpush2.bf16.msra.mxu0 %v3771_v62  ;;  %v3864_v62 = vld [vmem:[#allocation5 + $0x544] ss:$16 sps:$4 sm:$0xff]  }
  0xb1   : > { %1652 = vmatpush2.bf16.msra.mxu1 %v3772_v63  ;;  %1612 = vmatprep.subr.bf16.mxu0 %v3773_v0  ;;  %v3859_v63 = vld [vmem:[#allocation5 + $0x188] ss:$16 sps:$4 sm:$0xff]   ;;  %v3862_v0 = vld [vmem:[#allocation5 + $0x540] ss:$16 sps:$4 sm:$0xff]  }
  0xb2   : > { %1653 = vmatprep.subr.bf16.mxu1 %v3775_v1  ;;  %v3867_v1 = vld [vmem:[#allocation5 + $0x16c] ss:$16 sps:$4 sm:$0xff]  }
  0xb4   : > { %1613 = vmatpush2.bf16.msra.mxu0 %v3777_v2  ;;  %v3870_v2 = vld [vmem:[#allocation5 + $0x524] ss:$16 sps:$4 sm:$0xff]  }
  0xb5   : > { %1654 = vmatpush2.bf16.msra.mxu1 %v3778_v3  ;;  %1664 = vmatprep.subr.bf16.mxu0 %v3785_v4  ;;  %v3865_v3 = vld [vmem:[#allocation5 + $0x168] ss:$16 sps:$4 sm:$0xff]   ;;  %v3868_v4 = vld [vmem:[#allocation5 + $0x520] ss:$16 sps:$4 sm:$0xff]  }
  0xb6   : > { %1719 = vmatprep.subr.bf16.mxu1 %v3788_v5  ;;  %v3873_v5 = vld [vmem:[#allocation5 + $0x14c] ss:$16 sps:$4 sm:$0xff]  }
  0xb7   : > { %1615 = vmatmul.mubr.bf16.vlgmr.msra.gmra.mxu0 %v4580_v6 }
  0xb8   : > { %1656 = vmatmul.mubr.bf16.vlgmr.msra.gmra.mxu1 %v4582_v7  ;;  %1665 = vmatpush1.bf16.msra.mxu0 %v3783_v8  ;;  %v3876_v8 = vld [vmem:[#allocation5 + $0x504] ss:$16 sps:$4 sm:$0xff]  }
  0xb9   : > { %1720 = vmatpush1.bf16.msra.mxu1 %v3786_v9  ;;  %1666 = vmatprep.subr.bf16.mxu0 %v3791_v10  ;;  %v3871_v9 = vld [vmem:[#allocation5 + $0x148] ss:$16 sps:$4 sm:$0xff]   ;;  %v3874_v10 = vld [vmem:[#allocation5 + $0x500] ss:$16 sps:$4 sm:$0xff]  }
  0xba   : > { %1737 = vmatprep.mubr.bf16.mxu1 %v4368_v13  ;;  %1746 = vmatprep.subr.bf16.mxu1 %v3794_v11  ;;  %v3881_v11 = vld [vmem:[#allocation5 + $0x12c] ss:$16 sps:$4 sm:$0xff]  }
  0xbb   : > { %1696 = vmatprep.mubr.bf16.mxu0 %v4595_v33 }
  0xbc   : > { %1667 = vmatpush1.bf16.msra.mxu0 %v3789_v12  ;;  %v3884_v12 = vld [vmem:[#allocation5 + $0x2ec] ss:$16 sps:$4 sm:$0xff]  }
  0xbd   : > { %1668 = vmatprep.subr.bf16.mxu0 %v3797_v14  ;;  %v4600_v14 = vcombine.low %v4591_v32, %v4591_v32  ;;  %v3906_v32 = vld [vmem:[#allocation5 + $0x268] ss:$16 sps:$4 sm:$0xff]  }
  0xc0   : > { %3362 = vmatmul.mubr.msk.bf16.vlgmr.msra.gmra.mxu1 %vm1578_vm0, %v3798_v17  ;;  %1669 = vmatpush1.bf16.msra.mxu0 %v3795_v16  ;;  %v3882_v16 = vld [vmem:[#allocation5 + $0x2e8] ss:$16 sps:$4 sm:$0xff]   ;;  %v3887_v17 = vld [vmem:[#allocation5 + $0x10c] ss:$16 sps:$4 sm:$0xff]  }
  0xc1   : > { %1747 = vmatpush1.bf16.msra.mxu1 %v3792_v15  ;;  %1670 = vmatprep.subr.bf16.mxu0 %v3804_v19  ;;  %v3879_v15 = vld [vmem:[#allocation5 + $0x128] ss:$16 sps:$4 sm:$0xff]  }
  0xc2   : > { %1748 = vmatprep.subr.bf16.mxu1 %v3801_v18  ;;  %1778 = vmatprep.mubr.bf16.mxu1 %v4573_v47  ;;  %v3838_v47 = vld [vmem:[#allocation5 + $0x5c0] ss:$16 sps:$4 sm:$0xff]   ;;  %v3890_v18 = vld [vmem:[#allocation5 + $0x2cc] ss:$16 sps:$4 sm:$0xff]   ;;  %v3885_v19 = vld [vmem:[#allocation5 + $0x108] ss:$16 sps:$4 sm:$0xff]  }
  0xc4   : > { %1671 = vmatpush1.bf16.msra.mxu0 %v3802_v21  ;;  %v3893_v21 = vld [vmem:[#allocation5 + $0x4ec] ss:$16 sps:$4 sm:$0xff]  }
  0xc5   : > { %1749 = vmatpush1.bf16.msra.mxu1 %v3799_v20  ;;  %1672 = vmatprep.subr.bf16.mxu0 %v3810_v23  ;;  %v3888_v20 = vld [vmem:[#allocation5 + $0x2c8] ss:$16 sps:$4 sm:$0xff]  }
  0xc6   : > { %1750 = vmatprep.subr.bf16.mxu1 %v3807_v22  ;;  %v3896_v22 = vld [vmem:[#allocation5 + $0x2ac] ss:$16 sps:$4 sm:$0xff]   ;;  %v3891_v23 = vld [vmem:[#allocation5 + $0x4e8] ss:$16 sps:$4 sm:$0xff]  }
  0xc8   : > { %1673 = vmatpush1.bf16.msra.mxu0 %v3808_v25  ;;  %v3899_v25 = vld [vmem:[#allocation5 + $0x4cc] ss:$16 sps:$4 sm:$0xff]  }
  0xc9   : > { %1751 = vmatpush1.bf16.msra.mxu1 %v3805_v24  ;;  %1674 = vmatprep.subr.bf16.mxu0 %v3816_v27  ;;  %v3894_v24 = vld [vmem:[#allocation5 + $0x2a8] ss:$16 sps:$4 sm:$0xff]  }
  0xca   : > { %1752 = vmatprep.subr.bf16.mxu1 %v3813_v26  ;;  %v3902_v26 = vld [vmem:[#allocation5 + $0x28c] ss:$16 sps:$4 sm:$0xff]   ;;  %v3897_v27 = vld [vmem:[#allocation5 + $0x4c8] ss:$16 sps:$4 sm:$0xff]  }
  0xcc   : > { %1675 = vmatpush1.bf16.msra.mxu0 %v3814_v29  ;;  %v3905_v29 = vld [vmem:[#allocation5 + $0x4ac] ss:$16 sps:$4 sm:$0xff]  }
  0xcd   : > { %1753 = vmatpush1.bf16.msra.mxu1 %v3811_v28  ;;  %1676 = vmatprep.subr.bf16.mxu0 %v3822_v31  ;;  %v3900_v28 = vld [vmem:[#allocation5 + $0x288] ss:$16 sps:$4 sm:$0xff]  }
  0xce   : > { %1754 = vmatprep.subr.bf16.mxu1 %v3819_v30  ;;  %v3908_v30 = vld [vmem:[#allocation5 + $0x26c] ss:$16 sps:$4 sm:$0xff]   ;;  %v3903_v31 = vld [vmem:[#allocation5 + $0x4a8] ss:$16 sps:$4 sm:$0xff]  }
  0xd0   : > { %1677 = vmatpush1.bf16.msra.mxu0 %v3820_v35  ;;  %v3909_v35 = vld [vmem:[#allocation5 + $0x488] ss:$16 sps:$4 sm:$0xff]  }
  0xd1   : > { %1755 = vmatpush1.bf16.msra.mxu1 %v3817_v34  ;;  %1678 = vmatprep.subr.bf16.mxu0 %v3828_v37  ;;  %v3914_v34 = vld [vmem:[#allocation5 + $0x24c] ss:$16 sps:$4 sm:$0xff]  }
  0xd2   : > { %1756 = vmatprep.subr.bf16.mxu1 %v3825_v36  ;;  %v3917_v36 = vld [vmem:[#allocation5 + $0x46c] ss:$16 sps:$4 sm:$0xff]  }
  0xd3   : > { %v3920_v37 = vld [vmem:[#allocation5 + $0x22c] ss:$16 sps:$4 sm:$0xff]  }
  0xd4   : > { %1679 = vmatpush1.bf16.msra.mxu0 %v3826_v39  ;;  %v3918_v39 = vld [vmem:[#allocation5 + $0x228] ss:$16 sps:$4 sm:$0xff]  }
  0xd5   : > { %1757 = vmatpush1.bf16.msra.mxu1 %v3823_v38  ;;  %1680 = vmatprep.subr.bf16.mxu0 %v3834_v41  ;;  %v3915_v38 = vld [vmem:[#allocation5 + $0x468] ss:$16 sps:$4 sm:$0xff]  }
  0xd6   : > { %1758 = vmatprep.subr.bf16.mxu1 %v3831_v40  ;;  %v3923_v40 = vld [vmem:[#allocation5 + $0x44c] ss:$16 sps:$4 sm:$0xff]   ;;  %v3921_v41 = vld [vmem:[#allocation5 + $0x448] ss:$16 sps:$4 sm:$0xff]  }
  0xd8   : > { %1681 = vmatpush2.bf16.msra.mxu0 %v3832_v43  ;;  %v3929_v43 = vld [vmem:[#allocation5 + $0x42c] ss:$16 sps:$4 sm:$0xff]  }
  0xd9   : > { %1759 = vmatpush1.bf16.msra.mxu1 %v3829_v42  ;;  %1682 = vmatprep.subr.bf16.mxu0 %v3840_v45  ;;  %v3924_v42 = vld [vmem:[#allocation5 + $0x208] ss:$16 sps:$4 sm:$0xff]  }
  0xda   : > { %1760 = vmatprep.subr.bf16.mxu1 %v3837_v44  ;;  %v3932_v44 = vld [vmem:[#allocation5 + $0x3ec] ss:$16 sps:$4 sm:$0xff]   ;;  %v3927_v45 = vld [vmem:[#allocation5 + $0x428] ss:$16 sps:$4 sm:$0xff]  }
  0xdc   : > { %1683 = vmatpush2.bf16.msra.mxu0 %v3838_v47  ;;  %v3935_v47 = vld [vmem:[#allocation5 + $0x40c] ss:$16 sps:$4 sm:$0xff]  }
  0xdd   : > { %1761 = vmatpush1.bf16.msra.mxu1 %v3835_v46  ;;  %1684 = vmatprep.subr.bf16.mxu0 %v3846_v49  ;;  %v3930_v46 = vld [vmem:[#allocation5 + $0x3e8] ss:$16 sps:$4 sm:$0xff]  }
  0xde   : > { %1762 = vmatprep.subr.bf16.mxu1 %v3843_v48  ;;  %v3938_v48 = vld [vmem:[#allocation5 + $0x3cc] ss:$16 sps:$4 sm:$0xff]   ;;  %v3933_v49 = vld [vmem:[#allocation5 + $0x408] ss:$16 sps:$4 sm:$0xff]  }
  0xe0   : > { %1685 = vmatpush2.bf16.msra.mxu0 %v3844_v52  ;;  %v3941_v52 = vld [vmem:[#allocation5 + $0x5ec] ss:$16 sps:$4 sm:$0xff]  }
  0xe1   : > { %1763 = vmatpush2.bf16.msra.mxu1 %v3841_v50  ;;  %1686 = vmatprep.subr.bf16.mxu0 %v3852_v54  ;;  %v3936_v50 = vld [vmem:[#allocation5 + $0x3c8] ss:$16 sps:$4 sm:$0xff]  }
  0xe2   : > { %1764 = vmatprep.subr.bf16.mxu1 %v3849_v53  ;;  %v3944_v53 = vld [vmem:[#allocation5 + $0x3ac] ss:$16 sps:$4 sm:$0xff]   ;;  %v3939_v54 = vld [vmem:[#allocation5 + $0x5e8] ss:$16 sps:$4 sm:$0xff]  }
  0xe4   : > { %1687 = vmatpush2.bf16.msra.mxu0 %v3850_v56  ;;  %v3947_v56 = vld [vmem:[#allocation5 + $0x5cc] ss:$16 sps:$4 sm:$0xff]  }
  0xe5   : > { %1765 = vmatpush2.bf16.msra.mxu1 %v3847_v55  ;;  %1688 = vmatprep.subr.bf16.mxu0 %v3858_v58  ;;  %v3942_v55 = vld [vmem:[#allocation5 + $0x3a8] ss:$16 sps:$4 sm:$0xff]  }
  0xe6   : > { %1766 = vmatprep.subr.bf16.mxu1 %v3855_v57  ;;  %v3950_v57 = vld [vmem:[#allocation5 + $0x38c] ss:$16 sps:$4 sm:$0xff]   ;;  %v3945_v58 = vld [vmem:[#allocation5 + $0x5c8] ss:$16 sps:$4 sm:$0xff]  }
  0xe8   : > { %1689 = vmatpush2.bf16.msra.mxu0 %v3856_v60  ;;  %v3953_v60 = vld [vmem:[#allocation5 + $0x5ac] ss:$16 sps:$4 sm:$0xff]  }
  0xe9   : > { %1767 = vmatpush2.bf16.msra.mxu1 %v3853_v59  ;;  %1690 = vmatprep.subr.bf16.mxu0 %v3864_v62  ;;  %v3948_v59 = vld [vmem:[#allocation5 + $0x388] ss:$16 sps:$4 sm:$0xff]  }
  0xea   : > { %1768 = vmatprep.subr.bf16.mxu1 %v3861_v61  ;;  %v3956_v61 = vld [vmem:[#allocation5 + $0x36c] ss:$16 sps:$4 sm:$0xff]   ;;  %v3951_v62 = vld [vmem:[#allocation5 + $0x5a8] ss:$16 sps:$4 sm:$0xff]  }
  0xec   : > { %1691 = vmatpush2.bf16.msra.mxu0 %v3862_v0  ;;  %v3959_v0 = vld [vmem:[#allocation5 + $0x58c] ss:$16 sps:$4 sm:$0xff]  }
  0xed   : > { %1769 = vmatpush2.bf16.msra.mxu1 %v3859_v63  ;;  %1692 = vmatprep.subr.bf16.mxu0 %v3870_v2  ;;  %v3954_v63 = vld [vmem:[#allocation5 + $0x368] ss:$16 sps:$4 sm:$0xff]  }
  0xee   : > { %1770 = vmatprep.subr.bf16.mxu1 %v3867_v1  ;;  %v3962_v1 = vld [vmem:[#allocation5 + $0x34c] ss:$16 sps:$4 sm:$0xff]   ;;  %v3957_v2 = vld [vmem:[#allocation5 + $0x588] ss:$16 sps:$4 sm:$0xff]  }
  0xf0   : > { %1693 = vmatpush2.bf16.msra.mxu0 %v3868_v4  ;;  %v3965_v4 = vld [vmem:[#allocation5 + $0x56c] ss:$16 sps:$4 sm:$0xff]  }
  0xf1   : > { %1771 = vmatpush2.bf16.msra.mxu1 %v3865_v3  ;;  %1694 = vmatprep.subr.bf16.mxu0 %v3876_v8  ;;  %v3960_v3 = vld [vmem:[#allocation5 + $0x348] ss:$16 sps:$4 sm:$0xff]  }
  0xf2   : > { %1772 = vmatprep.subr.bf16.mxu1 %v3873_v5  ;;  %v3968_v5 = vld [vmem:[#allocation5 + $0x32c] ss:$16 sps:$4 sm:$0xff]   ;;  %v3963_v8 = vld [vmem:[#allocation5 + $0x568] ss:$16 sps:$4 sm:$0xff]  }
  0xf4   : > { %1695 = vmatpush2.bf16.msra.mxu0 %v3874_v10  ;;  %v3971_v10 = vld [vmem:[#allocation5 + $0x54c] ss:$16 sps:$4 sm:$0xff]  }
  0xf5   : > { %1773 = vmatpush2.bf16.msra.mxu1 %v3871_v9  ;;  %1787 = vmatprep.subr.bf16.mxu0 %v3884_v12  ;;  %v3966_v9 = vld [vmem:[#allocation5 + $0x328] ss:$16 sps:$4 sm:$0xff]  }
  0xf6   : > { %1774 = vmatprep.subr.bf16.mxu1 %v3881_v11  ;;  %v3974_v11 = vld [vmem:[#allocation5 + $0x30c] ss:$16 sps:$4 sm:$0xff]   ;;  %v3969_v12 = vld [vmem:[#allocation5 + $0x548] ss:$16 sps:$4 sm:$0xff]  }
  0xf7   : > { %1697 = vmatmul.mubr.bf16.vlgmr.msra.gmra.mxu0 %v4600_v14 }
  0xf8   : > { %1788 = vmatpush1.bf16.msra.mxu0 %v3882_v16  ;;  %1819 = vmatprep.mubr.bf16.mxu0 %v4576_v51  ;;  %v3911_v51 = vld [vmem:[#allocation5 + $0x48c] ss:$16 sps:$4 sm:$0xff]  }
  0xf9   : > { %1775 = vmatpush2.bf16.msra.mxu1 %v3879_v15  ;;  %1789 = vmatprep.subr.bf16.mxu0 %v3890_v18  ;;  %v3972_v15 = vld [vmem:[#allocation5 + $0x308] ss:$16 sps:$4 sm:$0xff]   ;;  %v3977_v16 = vld [vmem:[#allocation5 + $0x52c] ss:$16 sps:$4 sm:$0xff]  }
  0xfa   : > { %1776 = vmatprep.subr.bf16.mxu1 %v3887_v17  ;;  %v3980_v17 = vld [vmem:[#allocation5 + $0x60c] ss:$16 sps:$4 sm:$0xff]   ;;  %v3975_v18 = vld [vmem:[#allocation5 + $0x528] ss:$16 sps:$4 sm:$0xff]  }
  0xfc   : > { %1790 = vmatpush1.bf16.msra.mxu0 %v3888_v20  ;;  %v3983_v20 = vld [vmem:[#allocation5 + $0x50c] ss:$16 sps:$4 sm:$0xff]  }
  0xfd   : > { %1777 = vmatpush2.bf16.msra.mxu1 %v3885_v19  ;;  %1791 = vmatprep.subr.bf16.mxu0 %v3896_v22  ;;  %v3978_v19 = vld [vmem:[#allocation5 + $0x608] ss:$16 sps:$4 sm:$0xff]  }
  0xfe   : > { %1828 = vmatprep.subr.bf16.mxu1 %v3893_v21  ;;  %v3986_v21 = vld [vmem:[#allocation8 + $0xac] ss:$12 sps:$4 sm:$0xff]   ;;  %v3981_v22 = vld [vmem:[#allocation5 + $0x508] ss:$16 sps:$4 sm:$0xff]  }
 0x100   : > { %1779 = vmatmul.mubr.bf16.vlgmr.msra.gmra.mxu1 %v4580_v6  ;;  %1792 = vmatpush1.bf16.msra.mxu0 %v3894_v24  ;;  %v3912_v6 = vld [vmem:[#allocation5 + $0x248] ss:$16 sps:$4 sm:$0xff]  }
 0x101   : > { %1829 = vmatpush1.bf16.msra.mxu1 %v3891_v23  ;;  %1793 = vmatprep.subr.bf16.mxu0 %v3902_v26  ;;  %v3984_v23 = vld [vmem:[#allocation8 + $0xa8] ss:$12 sps:$4 sm:$0xff]   ;;  %v3987_v26 = vld [vmem:[#allocation8 + $0x90] ss:$12 sps:$4 sm:$0xff]  }
 0x102   : > { %1830 = vmatprep.subr.bf16.mxu1 %v3899_v25  ;;  %1860 = vmatprep.mubr.bf16.mxu1 %v4595_v33  ;;  %v3926_v33 = vld [vmem:[#allocation5 + $0x20c] ss:$16 sps:$4 sm:$0xff]   ;;  %v3989_v24 = vld [vmem:[#allocation8 + $0x94] ss:$12 sps:$4 sm:$0xff]  }
 0x103   : > { %v4150_v25 = vld [vmem:[%s4558_s14 + $0x18] ss:$0 sps:$4 sm:$0xff]   ;;  %s4289_s14 = scalar_lea.vmem %s4288_s21, 256 }
 0x104   : > { %1794 = vmatpush1.bf16.msra.mxu0 %v3900_v28  ;;  %v3995_v28 = vld [vmem:[#allocation8 + $0x64] ss:$12 sps:$4 sm:$0xff]   ;;  %p4291_p5 = scmp.lt.s32.totalorder %s4289_s14, %s4283_s30 }
 0x105   : > { %1831 = vmatpush1.bf16.msra.mxu1 %v3897_v27  ;;  %1795 = vmatprep.subr.bf16.mxu0 %v3908_v30  ;;  %v3992_v27 = vld [vmem:[#allocation8 + $0x7c] ss:$12 sps:$4 sm:$0xff]  }
 0x106   : > { %1832 = vmatprep.subr.bf16.mxu1 %v3905_v29  ;;  %v3993_v29 = vld [vmem:[#allocation8 + $0x60] ss:$12 sps:$4 sm:$0xff]   ;;  %v3996_v30 = vld [vmem:[#allocation8 + $0x48] ss:$12 sps:$4 sm:$0xff]   ;;  %p4292_p9 = por %p4291_p5, %p4290_p0 }
 0x108   : > { %1796 = vmatpush1.bf16.msra.mxu0 %v3906_v32  ;;  %v4004_v32 = vld [vmem:[#allocation8 + $0x1c] ss:$12 sps:$4 sm:$0xff]   ;;  %p4293_p11 = pnand %p4292_p9, %p4286_p6 }
 0x109   : > { %1833 = vmatpush1.bf16.msra.mxu1 %v3903_v31  ;;  %1797 = vmatprep.subr.bf16.mxu0 %v3914_v34  ;;  %v4001_v31 = vld [vmem:[#allocation8 + $0x34] ss:$12 sps:$4 sm:$0xff]  }
 0x10a   : > { %1834 = vmatprep.subr.bf16.mxu1 %v3911_v51  ;;  %v4002_v51 = vld [vmem:[#allocation8 + $0x18] ss:$12 sps:$4 sm:$0xff]   ;;  %v4036_v34 = vld [vmem:[#allocation8 + $0x228] ss:$12 sps:$4 sm:$0xff]  }
 0x10c   : > { %1798 = vmatpush1.bf16.msra.mxu0 %v3912_v6  ;;  %v4007_v6 = vld [vmem:[#allocation8 + $0x4] ss:$12 sps:$4 sm:$0xff]  }
 0x10d   : > { %1835 = vmatpush1.bf16.msra.mxu1 %v3909_v35  ;;  %1799 = vmatprep.subr.bf16.mxu0 %v3920_v37  ;;  %v4038_v35 = vld [vmem:[#allocation8 + $0x22c] ss:$12 sps:$4 sm:$0xff]   ;;  %v4041_v37 = vld [vmem:[#allocation8 + $0x210] ss:$12 sps:$4 sm:$0xff]  }
 0x10e   : > { %1836 = vmatprep.subr.bf16.mxu1 %v3917_v36  ;;  %v4005_v36 = vld [vmem:[#allocation8] ss:$12 sps:$4 sm:$0xff]  }
 0x110   : > { %1800 = vmatpush1.bf16.msra.mxu0 %v3918_v39  ;;  %v4010_v39 = vld [vmem:[#allocation8 + $0x16c] ss:$12 sps:$4 sm:$0xff]  }
 0x111   : > { %1837 = vmatpush1.bf16.msra.mxu1 %v3915_v38  ;;  %1801 = vmatprep.subr.bf16.mxu0 %v3926_v33  ;;  %v4043_v38 = vld [vmem:[#allocation8 + $0x214] ss:$12 sps:$4 sm:$0xff]   ;;  %v4046_v33 = vld [vmem:[#allocation8 + $0x1f8] ss:$12 sps:$4 sm:$0xff]  }
 0x112   : > { %1838 = vmatprep.subr.bf16.mxu1 %v3923_v40  ;;  %v4008_v40 = vld [vmem:[#allocation8 + $0x168] ss:$12 sps:$4 sm:$0xff]  }
 0x114   : > { %1802 = vmatpush1.bf16.msra.mxu0 %v3924_v42  ;;  %v4013_v42 = vld [vmem:[#allocation8 + $0x154] ss:$12 sps:$4 sm:$0xff]  }
 0x115   : > { %1839 = vmatpush1.bf16.msra.mxu1 %v3921_v41  ;;  %1803 = vmatprep.subr.bf16.mxu0 %v3932_v44  ;;  %v4048_v41 = vld [vmem:[#allocation8 + $0x1fc] ss:$12 sps:$4 sm:$0xff]   ;;  %v4051_v44 = vld [vmem:[#allocation8 + $0x1e0] ss:$12 sps:$4 sm:$0xff]  }
 0x116   : > { %1840 = vmatprep.subr.bf16.mxu1 %v3929_v43  ;;  %v4011_v43 = vld [vmem:[#allocation8 + $0x150] ss:$12 sps:$4 sm:$0xff]  }
 0x118   : > { %1804 = vmatpush2.bf16.msra.mxu0 %v3930_v46  ;;  %v4016_v46 = vld [vmem:[#allocation8 + $0x13c] ss:$12 sps:$4 sm:$0xff]  }
 0x119   : > { %1841 = vmatpush1.bf16.msra.mxu1 %v3927_v45  ;;  %1805 = vmatprep.subr.bf16.mxu0 %v3938_v48  ;;  %v4053_v45 = vld [vmem:[#allocation8 + $0x1e4] ss:$12 sps:$4 sm:$0xff]   ;;  %v4056_v48 = vld [vmem:[#allocation8 + $0x1c8] ss:$12 sps:$4 sm:$0xff]  }
 0x11a   : > { %1842 = vmatprep.subr.bf16.mxu1 %v3935_v47  ;;  %v4014_v47 = vld [vmem:[#allocation8 + $0x138] ss:$12 sps:$4 sm:$0xff]  }
 0x11c   : > { %1806 = vmatpush2.bf16.msra.mxu0 %v3936_v50  ;;  %v4019_v50 = vld [vmem:[#allocation8 + $0x124] ss:$12 sps:$4 sm:$0xff]  }
 0x11d   : > { %1843 = vmatpush1.bf16.msra.mxu1 %v3933_v49  ;;  %1807 = vmatprep.subr.bf16.mxu0 %v3944_v53  ;;  %v4058_v49 = vld [vmem:[#allocation8 + $0x1cc] ss:$12 sps:$4 sm:$0xff]   ;;  %v4061_v53 = vld [vmem:[#allocation8 + $0x1b0] ss:$12 sps:$4 sm:$0xff]  }
 0x11e   : > { %1844 = vmatprep.subr.bf16.mxu1 %v3941_v52  ;;  %v4017_v52 = vld [vmem:[#allocation8 + $0x120] ss:$12 sps:$4 sm:$0xff]  }
 0x120   : > { %1808 = vmatpush2.bf16.msra.mxu0 %v3942_v55  ;;  %v4022_v55 = vld [vmem:[#allocation8 + $0x10c] ss:$12 sps:$4 sm:$0xff]  }
 0x121   : > { %1845 = vmatpush2.bf16.msra.mxu1 %v3939_v54  ;;  %1809 = vmatprep.subr.bf16.mxu0 %v3950_v57  ;;  %v4063_v54 = vld [vmem:[#allocation8 + $0x1b4] ss:$12 sps:$4 sm:$0xff]   ;;  %v4066_v57 = vld [vmem:[#allocation8 + $0x198] ss:$12 sps:$4 sm:$0xff]  }
 0x122   : > { %1846 = vmatprep.subr.bf16.mxu1 %v3947_v56  ;;  %v4020_v56 = vld [vmem:[#allocation8 + $0x108] ss:$12 sps:$4 sm:$0xff]  }
 0x124   : > { %1810 = vmatpush2.bf16.msra.mxu0 %v3948_v59  ;;  %v4025_v59 = vld [vmem:[#allocation8 + $0xf4] ss:$12 sps:$4 sm:$0xff]  }
 0x125   : > { %1847 = vmatpush2.bf16.msra.mxu1 %v3945_v58  ;;  %1811 = vmatprep.subr.bf16.mxu0 %v3956_v61  ;;  %v4068_v58 = vld [vmem:[#allocation8 + $0x19c] ss:$12 sps:$4 sm:$0xff]   ;;  %v4071_v61 = vld [vmem:[#allocation8 + $0x184] ss:$12 sps:$4 sm:$0xff]  }
 0x126   : > { %1848 = vmatprep.subr.bf16.mxu1 %v3953_v60  ;;  %v4069_v60 = vld [vmem:[#allocation8 + $0x180] ss:$12 sps:$4 sm:$0xff]  }
 0x128   : > { %1812 = vmatpush2.bf16.msra.mxu0 %v3954_v63  ;;  %v4074_v63 = vld [vmem:[#allocation8 + $0x2ec] ss:$12 sps:$4 sm:$0xff]  }
 0x129   : > { %1849 = vmatpush2.bf16.msra.mxu1 %v3951_v62  ;;  %1813 = vmatprep.subr.bf16.mxu0 %v3962_v1  ;;  %v4023_v62 = vld [vmem:[#allocation8 + $0xf0] ss:$12 sps:$4 sm:$0xff]   ;;  %v4072_v1 = vld [vmem:[#allocation8 + $0x2e8] ss:$12 sps:$4 sm:$0xff]  }
 0x12a   : > { %1850 = vmatprep.subr.bf16.mxu1 %v3959_v0  ;;  %v4028_v0 = vld [vmem:[#allocation8 + $0xdc] ss:$12 sps:$4 sm:$0xff]  }
 0x12c   : > { %1814 = vmatpush2.bf16.msra.mxu0 %v3960_v3  ;;  %v4031_v3 = vld [vmem:[#allocation8 + $0xc4] ss:$12 sps:$4 sm:$0xff]  }
 0x12d   : > { %1851 = vmatpush2.bf16.msra.mxu1 %v3957_v2  ;;  %1815 = vmatprep.subr.bf16.mxu0 %v3968_v5  ;;  %v4026_v2 = vld [vmem:[#allocation8 + $0xd8] ss:$12 sps:$4 sm:$0xff]  }
 0x12e   : > { %1852 = vmatprep.subr.bf16.mxu1 %v3965_v4 }
 0x130   : > { %1816 = vmatpush2.bf16.msra.mxu0 %v3966_v9  ;;  %v4077_v9 = vld [vmem:[#allocation8 + $0x2d4] ss:$12 sps:$4 sm:$0xff]  }
 0x131   : > { %1853 = vmatpush2.bf16.msra.mxu1 %v3963_v8  ;;  %1817 = vmatprep.subr.bf16.mxu0 %v3974_v11  ;;  %v4029_v8 = vld [vmem:[#allocation8 + $0xc0] ss:$12 sps:$4 sm:$0xff]  }
 0x132   : > { %1854 = vmatprep.subr.bf16.mxu1 %v3971_v10 }
 0x134   : > { %1818 = vmatpush2.bf16.msra.mxu0 %v3972_v15  ;;  %v4075_v15 = vld [vmem:[#allocation8 + $0x2d0] ss:$12 sps:$4 sm:$0xff]  }
 0x135   : > { %1855 = vmatpush2.bf16.msra.mxu1 %v3969_v12  ;;  %1883 = vmatprep.subr.bf16.mxu0 %v3980_v17  ;;  %v4032_v12 = vld [vmem:[#allocation8 + $0x170] ss:$12 sps:$4 sm:$0xff]  }
 0x136   : > { %1856 = vmatprep.subr.bf16.mxu1 %v3977_v16 }
 0x137   : > { %1820 = vmatmul.mubr.bf16.vlgmr.msra.gmra.mxu0 %v4582_v7  ;;  %v3990_v7 = vld [vmem:[#allocation8 + $0x78] ss:$12 sps:$4 sm:$0xff]  }
 0x138   : > { %1884 = vmatpush1.bf16.msra.mxu0 %v3978_v19  ;;  %1901 = vmatprep.mubr.bf16.mxu0 %v4368_v13  ;;  %v3998_v13 = vld [vmem:[#allocation8 + $0x4c] ss:$12 sps:$4 sm:$0xff]  }
 0x139   : > { %1857 = vmatpush2.bf16.msra.mxu1 %v3975_v18  ;;  %2575 = vmatprep.subr.bf16.mxu0 %v3986_v21  ;;  %v4080_v18 = vld [vmem:[#allocation8 + $0x2bc] ss:$12 sps:$4 sm:$0xff]   ;;  %v4078_v21 = vld [vmem:[#allocation8 + $0x2b8] ss:$12 sps:$4 sm:$0xff]  }
 0x13a   : > { %1858 = vmatprep.subr.bf16.mxu1 %v3983_v20 }
 0x13d   : > { %1859 = vmatpush2.bf16.msra.mxu1 %v3981_v22 }
 0x13e   : > { %2616 = vmatprep.subr.bf16.mxu1 %v4038_v35 }
 0x13f   : > { %3363 = vmatmul.mubr.msk.bf16.vlgmr.msra.gmra.mxu0 %vm1578_vm0, %v4150_v25  ;;  %v4081_v25 = vld [vmem:[#allocation8 + $0x2a0] ss:$12 sps:$4 sm:$0xff]  }
 0x140   : > { %1861 = vmatmul.mubr.bf16.vlgmr.msra.gmra.mxu1 %v4600_v14  ;;  %2576 = vmatpush1.bf16.msra.mxu0 %v3984_v23  ;;  %v3999_v14 = vld [vmem:[#allocation8 + $0x30] ss:$12 sps:$4 sm:$0xff]  }
 0x141   : > { %2577 = vmatprep.subr.bf16.mxu0 %v3989_v24  ;;  %2617 = vmatpush1.bf16.msra.mxu1 %v4036_v34  ;;  %v4083_v23 = vld [vmem:[#allocation8 + $0x2a4] ss:$12 sps:$4 sm:$0xff]   ;;  %v554_v34 = vlaneseq }
 0x142   : > { %2618 = vmatprep.subr.bf16.mxu1 %v4043_v38 }
 0x143   : > { %v4611_v35 = vshrl.u32 %v554_v34, 7 }
 0x144   : > { %2578 = vmatpush1.bf16.msra.mxu0 %v3987_v26 }
 0x145   : > { %2579 = vmatprep.subr.bf16.mxu0 %v3992_v27  ;;  %2619 = vmatpush1.bf16.msra.mxu1 %v4041_v37  ;;  %v4086_v27 = vld [vmem:[#allocation8 + $0x28c] ss:$12 sps:$4 sm:$0xff]   ;;  %v560_v37 = vsub.s32 1, %v4611_v35 }
 0x146   : > { %2620 = vmatprep.subr.bf16.mxu1 %v4048_v41 }
 0x148   : > { %2580 = vmatpush1.bf16.msra.mxu0 %v3990_v7 }
 0x149   : > { %2581 = vmatprep.subr.bf16.mxu0 %v3995_v28  ;;  %2621 = vmatpush1.bf16.msra.mxu1 %v4046_v33  ;;  %v4084_v28 = vld [vmem:[#allocation8 + $0x288] ss:$12 sps:$4 sm:$0xff]  }
 0x14a   : > { %2622 = vmatprep.subr.bf16.mxu1 %v4053_v45 }
 0x14c   : > { %2582 = vmatpush1.bf16.msra.mxu0 %v3993_v29  ;;  %v4089_v29 = vld [vmem:[#allocation8 + $0x274] ss:$12 sps:$4 sm:$0xff]  }
 0x14d   : > { %2583 = vmatprep.subr.bf16.mxu0 %v3998_v13  ;;  %2623 = vmatpush1.bf16.msra.mxu1 %v4051_v44  ;;  %v4087_v13 = vld [vmem:[#allocation8 + $0x270] ss:$12 sps:$4 sm:$0xff]  }
 0x14e   : > { %2624 = vmatprep.subr.bf16.mxu1 %v4058_v49 }
 0x150   : > { %2584 = vmatpush1.bf16.msra.mxu0 %v3996_v30  ;;  %v4092_v30 = vld [vmem:[#allocation8 + $0x25c] ss:$12 sps:$4 sm:$0xff]  }
 0x151   : > { %2585 = vmatprep.subr.bf16.mxu0 %v4001_v31  ;;  %2625 = vmatpush1.bf16.msra.mxu1 %v4056_v48  ;;  %v4090_v31 = vld [vmem:[#allocation8 + $0x258] ss:$12 sps:$4 sm:$0xff]  }
 0x152   : > { %2626 = vmatprep.subr.bf16.mxu1 %v4063_v54 }
 0x154   : > { %2586 = vmatpush1.bf16.msra.mxu0 %v3999_v14  ;;  %v4095_v14 = vld [vmem:[#allocation8 + $0x244] ss:$12 sps:$4 sm:$0xff]  }
 0x155   : > { %2587 = vmatprep.subr.bf16.mxu0 %v4004_v32  ;;  %2627 = vmatpush1.bf16.msra.mxu1 %v4061_v53  ;;  %v4093_v32 = vld [vmem:[#allocation8 + $0x240] ss:$12 sps:$4 sm:$0xff]  }
 0x156   : > { %2628 = vmatprep.subr.bf16.mxu1 %v4068_v58 }
 0x158   : > { %2588 = vmatpush1.bf16.msra.mxu0 %v4002_v51  ;;  %v4096_v51 = vld [vmem:[#allocation8 + $0x2f0] ss:$12 sps:$4 sm:$0xff]  }
 0x159   : > { %2589 = vmatprep.subr.bf16.mxu0 %v4007_v6  ;;  %2629 = vmatpush1.bf16.msra.mxu1 %v4066_v57  ;;  %v556_v6 = vsub.s32 0, %v4611_v35 }
 0x15a   : > { %2630 = vmatprep.subr.bf16.mxu1 %v4071_v61  ;;  %v4034_v61 = vld [vmem:[#allocation8 + $0x158] ss:$12 sps:$4 sm:$0xff]  }
 0x15c   : > { %2590 = vmatpush1.bf16.msra.mxu0 %v4005_v36  ;;  %v4614_v36 = vld [vmem:[#allocation7] sm:$0xf] }
 0x15d   : > { %2591 = vmatprep.subr.bf16.mxu0 %v4010_v39  ;;  %2631 = vmatpush1.bf16.msra.mxu1 %v4069_v60  ;;  %v557_v38 = vrot.slane %v4614_v36, %v556_v6  ;;  %v561_v39 = vrot.slane %v4614_v36, %v560_v37 }
 0x15e   : > { %2632 = vmatprep.subr.bf16.mxu1 %v4074_v63  ;;  %v4039_v63 = vld [vmem:[#allocation8 + $0x140] ss:$12 sps:$4 sm:$0xff]  }
 0x160   : > { %2592 = vmatpush2.bf16.msra.mxu0 %v4008_v40 }
 0x161   : > { %2593 = vmatprep.subr.bf16.mxu0 %v4013_v42  ;;  %2633 = vmatpush2.bf16.msra.mxu1 %v4072_v1  ;;  %v4044_v1 = vld [vmem:[#allocation8 + $0x128] ss:$12 sps:$4 sm:$0xff]  }
 0x162   : > { %2634 = vmatprep.subr.bf16.mxu1 %v4077_v9  ;;  %v4059_v9 = vld [vmem:[#allocation8 + $0xe0] ss:$12 sps:$4 sm:$0xff]  }
 0x164   : > { %2594 = vmatpush2.bf16.msra.mxu0 %v4011_v43 }
 0x165   : > { %2595 = vmatprep.subr.bf16.mxu0 %v4016_v46  ;;  %2635 = vmatpush2.bf16.msra.mxu1 %v4075_v15  ;;  %v564_v15 = vsub.s32 2, %v4611_v35 }
 0x166   : > { %2636 = vmatprep.subr.bf16.mxu1 %v4080_v18 }
 0x167   : > { %v565_v18 = vrot.slane %v4614_v36, %v564_v15 }
 0x168   : > { %2596 = vmatpush2.bf16.msra.mxu0 %v4014_v47 }
 0x169   : > { %2597 = vmatprep.subr.bf16.mxu0 %v4019_v50  ;;  %2637 = vmatpush2.bf16.msra.mxu1 %v4078_v21 }
 0x16a   : > { %2638 = vmatprep.subr.bf16.mxu1 %v4083_v23 }
 0x16c   : > { %2598 = vmatpush2.bf16.msra.mxu0 %v4017_v52 }
 0x16d   : > { %2599 = vmatprep.subr.bf16.mxu0 %v4022_v55  ;;  %2639 = vmatpush2.bf16.msra.mxu1 %v4081_v25 }
 0x16e   : > { %2640 = vmatprep.subr.bf16.mxu1 %v4086_v27 }
 0x170   : > { %2600 = vmatpush2.bf16.msra.mxu0 %v4020_v56 }
 0x171   : > { %2601 = vmatprep.subr.bf16.mxu0 %v4025_v59  ;;  %2641 = vmatpush2.bf16.msra.mxu1 %v4084_v28  ;;  %v4033_v59 = vld [vmem:[#allocation8 + $0xb0] ss:$12 sps:$4 sm:$0xff]  }
 0x172   : > { %2642 = vmatprep.subr.bf16.mxu1 %v4089_v29 }
 0x174   : > { %2602 = vmatpush2.bf16.msra.mxu0 %v4023_v62  ;;  %v4035_v62 = vld [vmem:[#allocation8 + $0x98] ss:$12 sps:$4 sm:$0xff]  }
 0x175   : > { %2603 = vmatprep.subr.bf16.mxu0 %v4028_v0  ;;  %2643 = vmatpush2.bf16.msra.mxu1 %v4087_v13  ;;  %v4040_v0 = vld [vmem:[#allocation8 + $0x80] ss:$12 sps:$4 sm:$0xff]  }
 0x176   : > { %2644 = vmatprep.subr.bf16.mxu1 %v4092_v30 }
 0x177   : > { %v1616_v4 = vpop.f32.mrf.mxu0 }
 0x178   : > { %v1657_v5 = vpop.f32.mrf.mxu1  ;;  %2604 = vmatpush2.bf16.msra.mxu0 %v4026_v2  ;;  %v1617_v40 = vadd.f32 %v1616_v4, %v557_v38  ;;  %v4045_v2 = vld [vmem:[#allocation8 + $0x68] ss:$12 sps:$4 sm:$0xff]   ;;  %v4050_v4 = vld [vmem:[#allocation8 + $0x50] ss:$12 sps:$4 sm:$0xff]  }
 0x179   : > { %v1618_v10 = vpop.f32.mrf.mxu0  ;;  %2605 = vmatprep.subr.bf16.mxu0 %v4031_v3  ;;  %2645 = vmatpush2.bf16.msra.mxu1 %v4090_v31  ;;  %v4049_v3 = vld [vmem:[#allocation8 + $0x110] ss:$12 sps:$4 sm:$0xff]  }
 0x17a   : > { %v1659_v11 = vpop.f32.mrf.mxu1  ;;  %2646 = vmatprep.subr.bf16.mxu1 %v4095_v14  ;;  %v1619_v33 = vadd.f32 %v1618_v10, %v561_v39  ;;  %v1658_v41 = vadd.f32 %v1657_v5, %v1617_v40  ;;  %v4054_v5 = vld [vmem:[#allocation8 + $0xf8] ss:$12 sps:$4 sm:$0xff]   ;;  %v4060_v10 = vld [vmem:[#allocation8 + $0x20] ss:$12 sps:$4 sm:$0xff]  }
 0x17b   : > { %v1620_v16 = vpop.f32.mrf.mxu0 }
 0x17c   : > { %v1661_v17 = vpop.f32.mrf.mxu1  ;;  %2606 = vmatpush2.bf16.msra.mxu0 %v4029_v8  ;;  %v1660_v43 = vadd.f32 %v1659_v11, %v1619_v33  ;;  %v4055_v8 = vld [vmem:[#allocation8 + $0x38] ss:$12 sps:$4 sm:$0xff]   ;;  %v4064_v11 = vld [vmem:[#allocation8 + $0xc8] ss:$12 sps:$4 sm:$0xff]   ;;  %v568_v16 = vsub.s32 3, %v4611_v35 }
 0x17d   : > { %v1621_v19 = vpop.f32.mrf.mxu0  ;;  %3489 = vmatprep.subr.bf16.mxu0 %v4032_v12  ;;  %2647 = vmatpush2.bf16.msra.mxu1 %v4093_v32  ;;  %v4065_v12 = vld [vmem:[#allocation8 + $0x8] ss:$12 sps:$4 sm:$0xff]   ;;  %v4097_v33 = vld [vmem:[#allocation8 + $0x230] ss:$12 sps:$4 sm:$0xff]  }
 0x17e   : > { %v1662_v20 = vpop.f32.mrf.mxu1  ;;  %3511 = vmatprep.subr.bf16.mxu1 %v4096_v51 }
 0x17f   : > { %v569_v20 = vrot.slane %v4614_v36, %v568_v16  ;;  %v4129_v16 = vld [vmem:[#allocation10 + $0xb0] sm:$0xff]  }
 0x180   : > { %v1739_v22 = vpop.f32.mrf.mxu1 }
 0x182   : > { %v1741_v24 = vpop.f32.mrf.mxu1 }
 0x184   : > { %v1743_v26 = vpop.f32.mrf.mxu1 }
 0x186   : > { %v1744_v7 = vpop.f32.mrf.mxu1 }
 0x1b7   : > { %v1698_v42 = vpop.f32.mrf.mxu0 }
 0x1b8   : > { %v1699_v44 = vadd.f32 %v1698_v42, %v1658_v41  ;;  %v4098_v42 = vld [vmem:[#allocation8 + $0x2d8] ss:$12 sps:$4 sm:$0xff]  }
 0x1b9   : > { %v1700_v45 = vpop.f32.mrf.mxu0 }
 0x1ba   : > { %v1740_v46 = vadd.f32 %v1739_v22, %v1699_v44  ;;  %v1701_v47 = vadd.f32 %v1700_v45, %v1660_v43  ;;  %v4099_v43 = vld [vmem:[#allocation8 + $0x218] ss:$12 sps:$4 sm:$0xff]   ;;  %v4100_v44 = vld [vmem:[#allocation8 + $0x2c0] ss:$12 sps:$4 sm:$0xff]  }
 0x1bb   : > { %v1702_v48 = vpop.f32.mrf.mxu0  ;;  %v4101_v45 = vld [vmem:[#allocation8 + $0x200] ss:$12 sps:$4 sm:$0xff]  }
 0x1bc   : > { %v1742_v49 = vadd.f32 %v1741_v24, %v1701_v47  ;;  %4136 = vtanh.f32 %v1740_v46  ;;  %v4102_v46 = vld [vmem:[#allocation8 + $0x2a8] ss:$12 sps:$4 sm:$0xff]   ;;  %v4104_v48 = vld [vmem:[#allocation8 + $0x290] ss:$12 sps:$4 sm:$0xff]  }
 0x1bd   : > { %v1703_v50 = vpop.f32.mrf.mxu0  ;;  %v4103_v47 = vld [vmem:[#allocation8 + $0x1e8] ss:$12 sps:$4 sm:$0xff]  }
 0x1be   : > { %4138 = vtanh.f32 %v1742_v49  ;;  %v4105_v49 = vld [vmem:[#allocation8 + $0x1d0] ss:$12 sps:$4 sm:$0xff]   ;;  %v4106_v50 = vld [vmem:[#allocation8 + $0x278] ss:$12 sps:$4 sm:$0xff]  }
 0x1c0   : > { %v1780_v52 = vpop.f32.mrf.mxu1 }
 0x1c1   : > { %v1781_v22 = vadd.f32 %v1780_v52, %v565_v18  ;;  %v4107_v52 = vld [vmem:[#allocation8 + $0x1b8] ss:$12 sps:$4 sm:$0xff]  }
 0x1c2   : > { %v1782_v53 = vpop.f32.mrf.mxu1  ;;  %v4131_v18 = vld [vmem:[#allocation10 + $0xa0] sm:$0xff]  }
 0x1c3   : > { %v1783_v24 = vadd.f32 %v1782_v53, %v569_v20  ;;  %v4108_v53 = vld [vmem:[#allocation8 + $0x260] ss:$12 sps:$4 sm:$0xff]   ;;  %v4133_v20 = vld [vmem:[#allocation10 + $0x90] sm:$0xff]  }
 0x1c4   : > { %v1784_v54 = vpop.f32.mrf.mxu1 }
 0x1c5   : > { %v4109_v54 = vld [vmem:[#allocation8 + $0x1a0] ss:$12 sps:$4 sm:$0xff]  }
 0x1c6   : > { %v1785_v55 = vpop.f32.mrf.mxu1 }
 0x1c7   : > { %v4110_v55 = vld [vmem:[#allocation8 + $0x248] ss:$12 sps:$4 sm:$0xff]  }
 0x1c9   : > { %v4137_v56 = vpop.eup %4136 }
 0x1ca   : > { %v1914_v60 = vpack.c.bf16 %v4137_v56, %v4137_v56  ;;  %v4111_v56 = vld [vmem:[#allocation8 + $0x188] ss:$12 sps:$4 sm:$0xff]  }
 0x1cb   : > { %v4139_v57 = vpop.eup %4138 }
 0x1cc   : > { %v1915_v58 = vpack.c.bf16 %v4139_v57, %v4139_v57  ;;  %v4112_v57 = vld [vmem:[#allocation10 + $0x78] sm:$0xff]  }
 0x1ce   : > { %2607 = vmatprep.mubr.bf16.mxu0 %v1915_v58 }
 0x1cf   : > { %2608 = vmatmul.mubr.bf16.vlgmr.msra.gmra.mxu0 %v1914_v60 }
 0x1d0   : > { %3490 = vmatpush3.bf16.msra.mxu0 %v4033_v59  ;;  %2689 = vmatprep.mubr.bf16.mxu0 %v1915_v58  ;;  %v4113_v58 = vld [vmem:[#allocation10 + $0x38] sm:$0xff]   ;;  %v4114_v59 = vld [vmem:[#allocation10 + $0x70] sm:$0xff]  }
 0x1d1   : > { %3491 = vmatprep.subr.bf16.mxu0 %v4034_v61  ;;  %v4116_v61 = vld [vmem:[#allocation10 + $0x68] sm:$0xff]  }
 0x1d4   : > { %3492 = vmatpush3.bf16.msra.mxu0 %v4035_v62  ;;  %v4117_v62 = vld [vmem:[#allocation10 + $0x28] sm:$0xff]  }
 0x1d5   : > { %3493 = vmatprep.subr.bf16.mxu0 %v4039_v63  ;;  %v4118_v63 = vld [vmem:[#allocation10 + $0x60] sm:$0xff]  }
 0x1d8   : > { %3494 = vmatpush3.bf16.msra.mxu0 %v4040_v0  ;;  %v4119_v0 = vld [vmem:[#allocation10 + $0x20] sm:$0xff]  }
 0x1d9   : > { %3495 = vmatprep.subr.bf16.mxu0 %v4044_v1  ;;  %v4120_v1 = vld [vmem:[#allocation10 + $0x58] sm:$0xff]  }
 0x1dc   : > { %3496 = vmatpush3.bf16.msra.mxu0 %v4045_v2  ;;  %v4121_v2 = vld [vmem:[#allocation10 + $0x18] sm:$0xff]  }
 0x1dd   : > { %3497 = vmatprep.subr.bf16.mxu0 %v4049_v3  ;;  %v4122_v3 = vld [vmem:[#allocation10 + $0x50] sm:$0xff]  }
 0x1e0   : > { %3498 = vmatpush3.bf16.msra.mxu0 %v4050_v4  ;;  %v4123_v4 = vld [vmem:[#allocation10 + $0x10] sm:$0xff]  }
 0x1e1   : > { %3499 = vmatprep.subr.bf16.mxu0 %v4054_v5  ;;  %v4124_v5 = vld [vmem:[#allocation10 + $0x48] sm:$0xff]  }
 0x1e4   : > { %3500 = vmatpush3.bf16.msra.mxu0 %v4055_v8  ;;  %v4125_v8 = vld [vmem:[#allocation10 + $0x8] sm:$0xff]  }
 0x1e5   : > { %3501 = vmatprep.subr.bf16.mxu0 %v4059_v9  ;;  %v4126_v9 = vld [vmem:[#allocation10 + $0x40] sm:$0xff]  }
 0x1e8   : > { %3502 = vmatpush3.bf16.msra.mxu0 %v4060_v10  ;;  %v4127_v10 = vld [vmem:[#allocation10] sm:$0xff]  }
 0x1e9   : > { %3503 = vmatprep.subr.bf16.mxu0 %v4064_v11  ;;  %v4128_v11 = vld [vmem:[#allocation10 + $0xb8] sm:$0xff]  }
 0x1ec   : > { %3504 = vmatpush3.bf16.msra.mxu0 %v4065_v12  ;;  %v4369_v12 = vmov 0.0  }
 0x1ed   : > { %3533 = vmatprep.subr.bf16.mxu0 %v4112_v57 }
 0x1ef   : > { %2690 = vmatmul.mubr.bf16.vlgmr.msra.gmra.mxu0 %v1914_v60  ;;  %v4115_v60 = vld [vmem:[#allocation10 + $0x30] sm:$0xff]  }
 0x1f0   : > { %3534 = vmatpush3.bf16.msra.mxu0 %v4113_v58 }
 0x1f1   : > { %3535 = vmatprep.subr.bf16.mxu0 %v4114_v59 }
 0x1f4   : > { %3536 = vmatpush3.bf16.msra.mxu0 %v4115_v60 }
 0x1f5   : > { %3537 = vmatprep.subr.bf16.mxu0 %v4116_v61 }
 0x1f7   : > { %v1821_v17 = vpop.f32.mrf.mxu0 }
 0x1f8   : > { %v1822_v25 = vadd.f32 %v1821_v17, %v1781_v22  ;;  %3538 = vmatpush3.bf16.msra.mxu0 %v4117_v62  ;;  %v4130_v17 = vld [vmem:[#allocation10 + $0xa8] sm:$0xff]   ;;  %v4135_v22 = vld [vmem:[#allocation10 + $0x80] sm:$0xff]  }
 0x1f9   : > { %v1823_v19 = vpop.f32.mrf.mxu0  ;;  %3539 = vmatprep.subr.bf16.mxu0 %v4118_v63 }
 0x1fa   : > { %v1824_v7 = vadd.f32 %v1823_v19, %v1783_v24  ;;  %v4132_v19 = vld [vmem:[#allocation10 + $0x98] sm:$0xff]  }
 0x1fb   : > { %v1825_v21 = vpop.f32.mrf.mxu0 }
 0x1fc   : > { %3540 = vmatpush3.bf16.msra.mxu0 %v4119_v0  ;;  %v4134_v21 = vld [vmem:[#allocation10 + $0x88] sm:$0xff]  }
 0x1fd   : > { %v1826_v23 = vpop.f32.mrf.mxu0  ;;  %3541 = vmatprep.subr.bf16.mxu0 %v4120_v1 }
 0x1ff   : > { %v1903_v27 = vpop.f32.mrf.mxu0 }
 0x200   : > { %v1862_v26 = vpop.f32.mrf.mxu1  ;;  %3542 = vmatpush3.bf16.msra.mxu0 %v4121_v2 }
 0x201   : > { %v1863_v28 = vadd.f32 %v1862_v26, %v1822_v25  ;;  %v1905_v13 = vpop.f32.mrf.mxu0  ;;  %3543 = vmatprep.subr.bf16.mxu0 %v4122_v3 }
 0x202   : > { %v1864_v29 = vpop.f32.mrf.mxu1 }
 0x203   : > { %v1904_v30 = vadd.f32 %v1903_v27, %v1863_v28  ;;  %v1865_v31 = vadd.f32 %v1864_v29, %v1824_v7  ;;  %v1907_v32 = vpop.f32.mrf.mxu0 }
 0x204   : > { %v1866_v14 = vpop.f32.mrf.mxu1  ;;  %3544 = vmatpush3.bf16.msra.mxu0 %v4123_v4 }
 0x205   : > { %v1906_v51 = vadd.f32 %v1905_v13, %v1865_v31  ;;  %4140 = vtanh.f32 %v1904_v30  ;;  %v1908_v38 = vpop.f32.mrf.mxu0  ;;  %3545 = vmatprep.subr.bf16.mxu0 %v4124_v5  ;;  %v2046_v30 = vld [vmem:[%s4693_s4] sm:$0x7] }
 0x206   : > { %v1867_v34 = vpop.f32.mrf.mxu1  ;;  %v2051_v31 = vrot.slane %v2046_v30, %v556_v6  ;;  %v2055_v14 = vrot.slane %v2046_v30, %v560_v37  ;;  %v2059_v6 = vrot.slane %v2046_v30, %v564_v15  ;;  %v3460_v15 = vld [vmem:[%s4695_s6] ss:$0 sm:$0xff] }
 0x207   : > { %4142 = vtanh.f32 %v1906_v51 }
 0x208   : > { %3546 = vmatpush3.bf16.msra.mxu0 %v4125_v8 }
 0x209   : > { %3547 = vmatprep.subr.bf16.mxu0 %v4126_v9 }
 0x20c   : > { %3548 = vmatpush3.bf16.msra.mxu0 %v4127_v10 }
 0x212   : > { %v4141_v36 = vpop.eup %4140 }
 0x213   : > { %v1916_v41 = vpack.c.bf16 %v4141_v36, %v4141_v36 }
 0x214   : > { %v4143_v39 = vpop.eup %4142 }
 0x215   : > { %v1917_v40 = vpack.c.bf16 %v4143_v39, %v4143_v39 }
 0x217   : > { %2648 = vmatprep.mubr.bf16.mxu1 %v1917_v40 }
 0x218   : > { %2649 = vmatmul.mubr.bf16.vlgmr.msra.gmra.mxu1 %v1916_v41 }
 0x219   : > { %3512 = vmatpush3.bf16.msra.mxu1 %v4097_v33  ;;  %2729 = vmatprep.mubr.bf16.mxu1 %v1917_v40 }
 0x21a   : > { %3513 = vmatprep.subr.bf16.mxu1 %v4098_v42 }
 0x21d   : > { %3514 = vmatpush3.bf16.msra.mxu1 %v4099_v43 }
 0x21e   : > { %3515 = vmatprep.subr.bf16.mxu1 %v4100_v44 }
 0x221   : > { %3516 = vmatpush3.bf16.msra.mxu1 %v4101_v45 }
 0x222   : > { %3517 = vmatprep.subr.bf16.mxu1 %v4102_v46 }
 0x225   : > { %3518 = vmatpush3.bf16.msra.mxu1 %v4103_v47 }
 0x226   : > { %3519 = vmatprep.subr.bf16.mxu1 %v4104_v48 }
 0x229   : > { %3520 = vmatpush3.bf16.msra.mxu1 %v4105_v49 }
 0x22a   : > { %3521 = vmatprep.subr.bf16.mxu1 %v4106_v50 }
 0x22d   : > { %3522 = vmatpush3.bf16.msra.mxu1 %v4107_v52 }
 0x22e   : > { %3523 = vmatprep.subr.bf16.mxu1 %v4108_v53 }
 0x231   : > { %3524 = vmatpush3.bf16.msra.mxu1 %v4109_v54 }
 0x232   : > { %3525 = vmatprep.subr.bf16.mxu1 %v4110_v55 }
 0x235   : > { %3526 = vmatpush3.bf16.msra.mxu1 %v4111_v56 }
 0x236   : > { %3564 = vmatprep.subr.bf16.mxu1 %v4369_v12 }
 0x238   : > { %2730 = vmatmul.mubr.bf16.vlgmr.msra.gmra.mxu1 %v1916_v41 }
 0x239   : > { %3565 = vmatpush3.bf16.msra.mxu1 %v4128_v11  ;;  %3580 = vmatprep.mubr.msk.bf16.mxu1 %vm4370_vm1, %v4369_v12 }
 0x23a   : > { %3566 = vmatprep.subr.bf16.mxu1 %v4369_v12 }
 0x23d   : > { %3567 = vmatpush3.bf16.msra.mxu1 %v4129_v16 }
 0x23e   : > { %3568 = vmatprep.subr.bf16.mxu1 %v4369_v12 }
 0x241   : > { %3569 = vmatpush3.bf16.msra.mxu1 %v4130_v17 }
 0x242   : > { %3570 = vmatprep.subr.bf16.mxu1 %v4369_v12 }
 0x245   : > { %3571 = vmatpush3.bf16.msra.mxu1 %v4131_v18 }
 0x246   : > { %3572 = vmatprep.subr.bf16.mxu1 %v4369_v12 }
 0x249   : > { %3573 = vmatpush3.bf16.msra.mxu1 %v4132_v19 }
 0x24a   : > { %3574 = vmatprep.subr.bf16.mxu1 %v4369_v12 }
 0x24d   : > { %3575 = vmatpush3.bf16.msra.mxu1 %v4133_v20 }
 0x24e   : > { %3576 = vmatprep.subr.bf16.mxu1 %v4369_v12 }
 0x251   : > { %3577 = vmatpush3.bf16.msra.mxu1 %v4134_v21 }
 0x252   : > { %3578 = vmatprep.subr.bf16.mxu1 %v4369_v12 }
 0x255   : > { %3579 = vmatpush3.bf16.msra.mxu1 %v4135_v22 }
 0x28f   : > { %v2609_v23 = vpop.f32.mrf.mxu0 }
 0x290   : > { %v2610_v32 = vadd.f32 %v2609_v23, %v2051_v31 }
 0x291   : > { %v2611_v24 = vpop.f32.mrf.mxu0 }
 0x292   : > { %v2612_v34 = vadd.f32 %v2611_v24, %v2055_v14 }
 0x293   : > { %v2613_v25 = vpop.f32.mrf.mxu0 }
 0x295   : > { %v2614_v26 = vpop.f32.mrf.mxu0 }
 0x2af   : > { %v3505_v27 = vpop.f32.mrf.mxu0 }
 0x2b1   : > { %v3506_v7 = vpop.f32.mrf.mxu0 }
 0x2b2   : > { %v3507_v28 = vadd.f32 %v3506_v7, %v3505_v27 }
 0x2b3   : > { %v3508_v29 = vpop.f32.mrf.mxu0 }
 0x2b4   : > { %v2692_v46 = vadd.f32 %v3507_v28, %v2059_v6 }
 0x2b5   : > { %v3509_v13 = vpop.f32.mrf.mxu0 }
 0x2d8   : > { %v2650_v51 = vpop.f32.mrf.mxu1 }
 0x2d9   : > { %v2651_v38 = vadd.f32 %v2650_v51, %v2610_v32 }
 0x2da   : > { %v2652_v36 = vpop.f32.mrf.mxu1 }
 0x2db   : > { %v2653_v39 = vadd.f32 %v2652_v36, %v2612_v34  ;;  %4144 = vtanh.f32 %v2651_v38 }
 0x2dc   : > { %v2654_v40 = vpop.f32.mrf.mxu1 }
 0x2dd   : > { %4146 = vtanh.f32 %v2653_v39 }
 0x2de   : > { %v2655_v33 = vpop.f32.mrf.mxu1 }
 0x2e8   : > { %v4145_v41 = vpop.eup %4144 }
 0x2e9   : > { %v2740_v44 = vpack.c.bf16 %v4145_v41, %v4145_v41 }
 0x2ea   : > { %v4147_v42 = vpop.eup %4146 }
 0x2eb   : > { %v2741_v43 = vpack.c.bf16 %v4147_v42, %v4147_v42 }
 0x2ed   : > { %2974 = vmatprep.mubr.bf16.mxu0 %v2741_v43 }
 0x2ee   : > { %2975 = vmatmul.mubr.bf16.vlgmr.msra.gmra.mxu0 %v2740_v44 }
 0x2f8   : > { %v3527_v37 = vpop.f32.mrf.mxu1 }
 0x2fa   : > { %v3528_v45 = vpop.f32.mrf.mxu1 }
 0x2fb   : > { %v3529_v47 = vadd.f32 %v3528_v45, %v3527_v37 }
 0x2fc   : > { %v3530_v48 = vpop.f32.mrf.mxu1 }
 0x2fd   : > { %v2732_v49 = vadd.f32 %v3529_v47, %v2692_v46 }
 0x2fe   : > { %v3531_v50 = vpop.f32.mrf.mxu1 }
 0x2ff   : > { %4148 = vtanh.f32 %v2732_v49 }
 0x30c   : > { %v4149_v52 = vpop.eup %4148 }
 0x30d   : > { %v2742_v53 = vpack.c.bf16 %v4149_v52, %v4149_v52 }
 0x30f   : > { %3581 = vmatmul.mubr.bf16.vlgmr.msra.gmra.mxu1 %v2742_v53 }
 0x3ae   : > { %v3549_v54 = vpop.f32.mrf.mxu0 }
 0x3b0   : > { %v3550_v55 = vpop.f32.mrf.mxu0 }
 0x3b1   : > { %v3551_v35 = vadd.f32 %v3550_v55, %v3549_v54 }
 0x3b2   : > { %v3552_v56 = vpop.f32.mrf.mxu0 }
 0x3b3   : > { %v2977_v58 = vadd.f32 %v3551_v35, %v3460_v15 }
 0x3b4   : > { %v3553_v57 = vpop.f32.mrf.mxu0 }
 0x3cf   : > { %v3016_v59 = vpop.f32.mrf.mxu1 }
 0x3d0   : > { %v3017_v60 = vadd.f32 %v3016_v59, %v2977_v58 }
 0x3d1   : > { %v3582_v61 = vpop.f32.mrf.mxu1 }
 0x3d2   : > { %3022 = vst [vmem:[%s350_s18] sm:$0xff] %v3017_v60 }
 0x3d3   : > { %v3019_v62 = vpop.f32.mrf.mxu1 }
 0x3d4   : > { %4296 = shalt.err (!%p4293_p11)
}
 0x3d5   : > { %s4297_s2 = scalar_lea.hbm %s4646_s23, 128  ;;  %s4301_s11 = scalar_lea.hbm %s4696_s7, 256 }
 0x3d6   : > { %p4298_p12 = scmp.ne.s32.totalorder %s4646_s23, %s4297_s2  ;;  %p4302_p4 = scmp.lt.s32.totalorder %s4646_s23, %s4696_s7 }
 0x3d7   : > { %p4303_p13 = scmp.lt.s32.totalorder %s4301_s11, %s4297_s2 }
 0x3d8   : > { %p4299_p1 = pnand %p4298_p12, %p4717_p7 }
 0x3d9   : > { %p4304_p2 = por %p4303_p13, %p4302_p4 }
 0x3da   : > { %p4300_p3 = pneg %p4299_p1 }
 0x3dc   : > { %p4305_p8 = pnand %p4304_p2, %p4300_p3 }
 0x3de   : > { %4308 = shalt.err (!%p4305_p8)
}
 0x3df   : > { %3605 = dma.vmem_to_hbm [thread:$0]  (%p4717_p7), %s4648_s15, 128, %s4646_s23, %s3024_s16   ;;  %v3583_v63 = vpop.f32.mrf.mxu1 }
 0x3e0 PF: > { %s3049_s17 = sand.u32 1, %s4343_s24   ;;  %p4718_p10 = scmp.ne.s32.totalorder %s4709_s29, 0 }
 0x3e1   : > { %p4719_p6 = scmp.ge.s32.totalorder %s4355_s27, 2  ;;  %s3050_s18 = scalar_lea.sflag [#allocation4], %s3049_s17 }
 0x3e3   : > { %p3625_p0 = pnand %p4719_p6, %p4718_p10 }
 0x3e5   : > { %p3626_p5 = pneg %p3625_p0 }
 0x3e7   : > { %4338 = dma.done.wait (%p3626_p5), %s3050_s18, 128  }
 0x3e8   : > { %4340 = vsyncadd (%p3626_p5), %s3050_s18, 4294967168  ;;  %p22_p9 = scmp.ge.s32.totalorder %s4497_s19, 4   ;;  %s4720_s24 = smov %s4347_s25 }
 0x3e9   : > { %s4721_s25 = smov %s4351_s26  ;;  %s4722_s26 = smov %s4508_s22 }
 0x3ea   : > { %s4723_s27 = smov %s4497_s19  ;;  %24 = sbr.rel (!%p22_p9) target bundleno = 10 (0xa), region = 109 }
 0x3ef   :  { %3055 = vsyncpa [#allocation3], 1 }
 0x3f0   :  { %3057 = vsyncpa [#allocation3 + $0x1], 1 }
 0x3f1   :  { %3058 = vsyncpa [#allocation6], 1 }
 0x3f2   :  { %3059 = vsyncpa [#allocation9], 1 }
 0x3f3   :  { %3060 = vsyncpa [#allocation4], 1 }
 0x3f4   :  { %3062 = vsyncpa [#allocation4 + $0x1], 1 }

</bundles_post_ra>
